<compile_context>
chip_gen: v6e
topology: v6e:2x2x1
jax: 0.10.0
libtpu: 0.0.40
codegen_flags: <defaults>
</compile_context>

<pallas_src>
import math

import jax
import jax.numpy as jnp
import numpy as np
from jax.experimental import pallas as pl
from jax.experimental.pallas import tpu as pltpu

# ------------------------- configuration -------------------------
B = 2          # batch
W = 8          # spatial width  (dim-1)
Hs = 8         # spatial height (dim-2)
C = 32         # hidden_size
NH = 4         # num_attention_heads
D = C // 2     # position_embedding_size (query_positional_score=True)
N = W * Hs     # number of tokens per image
MAX_POS = 8    # max_position_embeddings
SQRT_NORM = math.sqrt(C)

K_POS = 2 * W * D        # 256: folded row+col positional rows (interleaved per-head-width block)
REPS_POS = K_POS // C    # 8 lane-copies of q_h feed the positional matmul LHS

assert 2 * D == C and W == Hs, "folded positional layout assumes D == C/2 and a square grid"


# ------------------------- Pallas kernel -------------------------
def _attn_kernel(x_ref, wq_ref, bq_ref, wk_ref, bk_ref, wv_ref, bv_ref,
                 mask_ref, pos_ref, out_ref, ctx_sc):
    bb = x_ref.shape[0]                                        # batch elements in this block (static)
    x_bf = x_ref[...].reshape(bb * N, C).astype(jnp.bfloat16)  # (bb*N, C)

    # Q / K projections at M = bb*N rows.  Wq^T / bq come pre-scaled by 1/sqrt(C),
    # so no additional score scaling is needed later.
    q_bf = (jnp.dot(x_bf, wq_ref[...], preferred_element_type=jnp.float32)
            + bq_ref[...]).astype(jnp.bfloat16)                # (bb*N, NH*C)
    k_bf = (jnp.dot(x_bf, wk_ref[...], preferred_element_type=jnp.float32)
            + bk_ref[...]).astype(jnp.bfloat16)                # (bb*N, NH*C)

    for b in range(bb):                                        # static, fully unrolled
        v_b = x_bf[b * N:(b + 1) * N, :]                       # (N, C) values = raw hidden states
        for h in range(NH):
            q_hb = q_bf[b * N:(b + 1) * N, h * C:(h + 1) * C]  # (N, C) bf16
            k_hb = k_bf[b * N:(b + 1) * N, h * C:(h + 1) * C]  # (N, C) bf16

            # content scores: q_hb @ k_hb^T (contract the feature dim; K = C = 32)
            content = jax.lax.dot_general(
                q_hb, k_hb, (((1,), (1,)), ((), ())),
                preferred_element_type=jnp.float32)            # (N, N) f32

            # positional scores: masked 8-copy of q_hb against the folded row/col
            # embedding constant -- one K=256 MXU matmul.  mask is re-read from VMEM
            # each iteration instead of living in vregs for the whole kernel.
            lhs_pos = jnp.tile(q_hb, (1, REPS_POS)) * mask_ref[...]   # (N, K_POS) bf16
            pos = jnp.dot(lhs_pos, pos_ref[...],
                          preferred_element_type=jnp.float32)          # (N, N) f32

            scores = content + pos

            # softmax over flattened key positions: exp in bf16 (EUP), row-sum in f32,
            # normalization deferred to after the context matmul.
            m = jnp.max(scores, axis=-1, keepdims=True)
            p_bf = jnp.exp((scores - m).astype(jnp.bfloat16))          # (N, N) bf16
            l = jnp.sum(p_bf.astype(jnp.float32), axis=-1, keepdims=True)
            inv_l = pl.reciprocal(l, approx=True)                      # (N, 1) f32

            ctx = jnp.dot(p_bf, v_b, preferred_element_type=jnp.float32) * inv_l
            ctx_sc[b * N:(b + 1) * N, h * C:(h + 1) * C] = ctx.astype(jnp.bfloat16)

    # deferred output projection: one K = NH*C matmul + bias for the whole block
    out = jnp.dot(ctx_sc[...], wv_ref[...],
                  preferred_element_type=jnp.float32) + bv_ref[...]    # (bb*N, C) f32
    out_ref[...] = out.reshape(bb, N, C).astype(out_ref.dtype)


# ------------------------- wrapper -------------------------
def _pick_batch_block():
    """Merge the batch into one grid step on single-TensorCore chips (v5e/v6e);
    keep grid=(B,) "parallel" on multi-TC chips (v7x / megacore)."""
    try:
        kind = jax.devices()[0].device_kind.lower()
    except Exception:
        return 1
    single_tc = ("lite" in kind) or ("v5e" in kind) or ("v6e" in kind)
    return B if single_tc else 1


def learned_2d_relative_self_attention(x, params, batch_block):
    (wq_t, bq, wk_t, bk, wv_t, bv, mask_pos, pos_alt) = params

    xf = x.reshape(B, N, C)
    bb = batch_block
    assert B % bb == 0

    def full(shape):
        return pl.BlockSpec(shape, lambda g: (0,) * len(shape))

    in_specs = [
        pl.BlockSpec((bb, N, C), lambda g: (g, 0, 0)),  # x (per-step batch block)
        full((C, NH * C)),        # Wq^T (pre-scaled by 1/sqrt(C))   bf16
        full((1, NH * C)),        # bq   (pre-scaled)                f32
        full((C, NH * C)),        # Wk^T                             bf16
        full((1, NH * C)),        # bk                               f32
        full((NH * C, C)),        # Wv^T                             bf16
        full((1, C)),             # bv                               f32
        full((N, K_POS)),         # positional LHS mask              bf16
        full((K_POS, N)),         # folded row/col embedding RHS     bf16
    ]
    out_specs = pl.BlockSpec((bb, N, C), lambda g: (g, 0, 0))

    out = pl.pallas_call(
        _attn_kernel,
        out_shape=jax.ShapeDtypeStruct((B, N, C), x.dtype),
        grid=(B // bb,),
        in_specs=in_specs,
        out_specs=out_specs,
        scratch_shapes=[pltpu.VMEM((bb * N, NH * C), jnp.bfloat16)],   # per-head contexts
        compiler_params=pltpu.CompilerParams(dimension_semantics=("parallel",)),
    )(xf, wq_t, bq, wk_t, bk, wv_t, bv, mask_pos, pos_alt)

    return out.reshape(B, W, Hs, C)


# ------------------------- reference (pure JAX, mirrors torch forward) ----
def reference(x, Wq, bq, Wk, bk, Wv, bv, row_emb, col_emb):
    b, w, h, c = x.shape
    q = (x.reshape(-1, c) @ Wq.T + bq).reshape(b, w, h, NH, C)
    k = (x.reshape(-1, c) @ Wk.T + bk).reshape(b, w, h, NH, C)
    q_row, q_col = q[..., :D], q[..., D:]
    row_scores = jnp.einsum('bijhd,ikd->bijhk', q_row, row_emb)
    col_scores = jnp.einsum('bijhd,jld->bijhl', q_col, col_emb)
    scores = (row_scores[..., :, None] + col_scores[..., None, :]) / SQRT_NORM
    content = jnp.einsum('bijhd,bklhd->bijhkl', q, k) / SQRT_NORM
    scores = scores + content
    shp = scores.shape
    probs = jax.nn.softmax(scores.reshape(*shp[:-2], -1), axis=-1).reshape(shp)
    iv = jnp.einsum('bijhkl,bkld->bijhd', probs, x).reshape(b, w, h, NH * C)
    return iv @ Wv.T + bv


# ------------------------- main -------------------------
if __name__ == "__main__":
    key = jax.random.PRNGKey(0)
    ks = jax.random.split(key, 9)
    scale = 0.1

    # deterministic parameter init (torch Linear weights are (out, in))
    row_table = jax.random.normal(ks[0], (2 * MAX_POS - 1, D), jnp.float32) * scale
    col_table = jax.random.normal(ks[1], (2 * MAX_POS - 1, D), jnp.float32) * scale
    Wq = jax.random.normal(ks[2], (NH * C, C), jnp.float32) * scale
    bq = jax.random.normal(ks[3], (NH * C,), jnp.float32) * scale
    Wk = jax.random.normal(ks[4], (NH * C, C), jnp.float32) * scale
    bk = jax.random.normal(ks[5], (NH * C,), jnp.float32) * scale
    Wv = jax.random.normal(ks[6], (C, NH * C), jnp.float32) * scale
    bv = jax.random.normal(ks[7], (C,), jnp.float32) * scale
    x = jax.random.normal(ks[8], (B, W, Hs, C), jnp.float32)

    # relative_indices buffer + embedding gather (glue, not hot path)
    deltas = jnp.arange(MAX_POS)[None, :] - jnp.arange(MAX_POS)[:, None]
    rel_idx = deltas + MAX_POS - 1
    row_emb = row_table[rel_idx[:W, :W].reshape(-1)].reshape(W, W, D)      # (W, W, D)
    col_emb = col_table[rel_idx[:Hs, :Hs].reshape(-1)].reshape(Hs, Hs, D)  # (Hs, Hs, D)

    # ---- kernel-side constants: folded positional matmul RHS + selection mask ----
    i_of = jnp.arange(N) // Hs          # dim-1 index of each token
    j_of = jnp.arange(N) % Hs           # dim-2 index of each token

    # pos_alt[p*C + c, m] = row_emb[p, i_of(m), c]      for c <  D
    #                     = col_emb[p, j_of(m), c - D]   for c >= D
    row_part = jnp.transpose(row_emb[:, i_of, :], (0, 2, 1))   # (W,  D, N)
    col_part = jnp.transpose(col_emb[:, j_of, :], (0, 2, 1))   # (Hs, D, N)
    pos_alt = jnp.concatenate([row_part, col_part], axis=1).reshape(K_POS, N)

    # mask_pos[n, p*C + c] = [p == i_of(n)] for c < D, [p == j_of(n)] for c >= D
    pk = jnp.arange(K_POS) // C
    ck = jnp.arange(K_POS) % C
    own = jnp.where(ck[None, :] < D, i_of[:, None], j_of[:, None])
    mask_pos = (own == pk[None, :]).astype(jnp.float32)

    inv_sqrt = 1.0 / SQRT_NORM
    params = (
        (Wq.T * inv_sqrt).astype(jnp.bfloat16),   # 1/sqrt(C) folded into the query proj
        (bq * inv_sqrt).reshape(1, -1),
        Wk.T.astype(jnp.bfloat16), bk.reshape(1, -1),
        Wv.T.astype(jnp.bfloat16), bv.reshape(1, -1),
        mask_pos.astype(jnp.bfloat16),            # 0/1: exact in bf16
        pos_alt.astype(jnp.bfloat16),
    )

    batch_block = _pick_batch_block()
    out = learned_2d_relative_self_attention(x, params, batch_block)
    out = jax.block_until_ready(out)

    ref = reference(x, Wq, bq, Wk, bk, Wv, bv, row_emb, col_emb)
    np.testing.assert_allclose(np.asarray(out), np.asarray(ref), atol=2e-2, rtol=2e-2)

    print("KERNEL_OK")
</pallas_src>

<mosaic_0001>
module attributes {stable_mosaic.version = 11 : i64} {
  func.func @_attn_kernel(%arg0: i32, %arg1: memref<1x64x32xf32, #tpu.memory_space<vmem>>, %arg2: memref<32x128xbf16, #tpu.memory_space<vmem>>, %arg3: memref<1x128xf32, #tpu.memory_space<vmem>>, %arg4: memref<32x128xbf16, #tpu.memory_space<vmem>>, %arg5: memref<1x128xf32, #tpu.memory_space<vmem>>, %arg6: memref<128x32xbf16, #tpu.memory_space<vmem>>, %arg7: memref<1x32xf32, #tpu.memory_space<vmem>>, %arg8: memref<64x256xbf16, #tpu.memory_space<vmem>>, %arg9: memref<256x64xbf16, #tpu.memory_space<vmem>>, %arg10: memref<1x64x32xf32, #tpu.memory_space<vmem>>, %arg11: memref<64x128xbf16, #tpu.memory_space<vmem>>) attributes {dimension_semantics = [#tpu.dimension_semantics<parallel>], iteration_bounds = array<i64: 2>, scalar_prefetch = 0 : i64, scratch_operands = 1 : i64, tpu.core_type = #tpu.core_type<tc>, window_params = [{transform_indices = @transform_0, window_bounds = array<i64: 1, 64, 32>}, {pipeline_mode = #tpu.pipeline_mode<synchronous>, transform_indices = @transform_1, window_bounds = array<i64: 32, 128>}, {pipeline_mode = #tpu.pipeline_mode<synchronous>, transform_indices = @transform_2, window_bounds = array<i64: 1, 128>}, {pipeline_mode = #tpu.pipeline_mode<synchronous>, transform_indices = @transform_3, window_bounds = array<i64: 32, 128>}, {pipeline_mode = #tpu.pipeline_mode<synchronous>, transform_indices = @transform_4, window_bounds = array<i64: 1, 128>}, {pipeline_mode = #tpu.pipeline_mode<synchronous>, transform_indices = @transform_5, window_bounds = array<i64: 128, 32>}, {pipeline_mode = #tpu.pipeline_mode<synchronous>, transform_indices = @transform_6, window_bounds = array<i64: 1, 32>}, {pipeline_mode = #tpu.pipeline_mode<synchronous>, transform_indices = @transform_7, window_bounds = array<i64: 64, 256>}, {pipeline_mode = #tpu.pipeline_mode<synchronous>, transform_indices = @transform_8, window_bounds = array<i64: 256, 64>}, {transform_indices = @transform_9, window_bounds = array<i64: 1, 64, 32>}]} {
    %c0 = arith.constant 0 : index
    %c0_0 = arith.constant 0 : index
    %c0_1 = arith.constant 0 : index
    %0 = vector.load %arg1[%c0, %c0_0, %c0_1] : memref<1x64x32xf32, #tpu.memory_space<vmem>>, vector<1x64x32xf32>
    %1 = vector.shape_cast %0 : vector<1x64x32xf32> to vector<64x32xf32>
    %2 = arith.truncf %1 : vector<64x32xf32> to vector<64x32xbf16>
    %c0_2 = arith.constant 0 : index
    %c0_3 = arith.constant 0 : index
    %3 = vector.load %arg2[%c0_2, %c0_3] : memref<32x128xbf16, #tpu.memory_space<vmem>>, vector<32x128xbf16>
    %cst = arith.constant dense<0.000000e+00> : vector<64x128xf32>
    %4 = tpu.matmul %2, %3, %cst {dimension_numbers = #tpu.dot_dimension_numbers<[1], [0], [0], [1], [0, 0, 1, 1], [], []>} : vector<64x32xbf16>, vector<32x128xbf16>, vector<64x128xf32> -> vector<64x128xf32>
    %c0_4 = arith.constant 0 : index
    %c0_5 = arith.constant 0 : index
    %5 = vector.load %arg3[%c0_4, %c0_5] : memref<1x128xf32, #tpu.memory_space<vmem>>, vector<1x128xf32>
    %6 = vector.broadcast %5 : vector<1x128xf32> to vector<64x128xf32>
    %7 = arith.addf %4, %6 : vector<64x128xf32>
    %8 = arith.truncf %7 : vector<64x128xf32> to vector<64x128xbf16>
    %c0_6 = arith.constant 0 : index
    %c0_7 = arith.constant 0 : index
    %9 = vector.load %arg4[%c0_6, %c0_7] : memref<32x128xbf16, #tpu.memory_space<vmem>>, vector<32x128xbf16>
    %cst_8 = arith.constant dense<0.000000e+00> : vector<64x128xf32>
    %10 = tpu.matmul %2, %9, %cst_8 {dimension_numbers = #tpu.dot_dimension_numbers<[1], [0], [0], [1], [0, 0, 1, 1], [], []>} : vector<64x32xbf16>, vector<32x128xbf16>, vector<64x128xf32> -> vector<64x128xf32>
    %c0_9 = arith.constant 0 : index
    %c0_10 = arith.constant 0 : index
    %11 = vector.load %arg5[%c0_9, %c0_10] : memref<1x128xf32, #tpu.memory_space<vmem>>, vector<1x128xf32>
    %12 = vector.broadcast %11 : vector<1x128xf32> to vector<64x128xf32>
    %13 = arith.addf %10, %12 : vector<64x128xf32>
    %14 = arith.truncf %13 : vector<64x128xf32> to vector<64x128xbf16>
    %15 = vector.extract_strided_slice %8 {offsets = [0, 0], sizes = [64, 32], strides = [1, 1]} : vector<64x128xbf16> to vector<64x32xbf16>
    %16 = vector.extract_strided_slice %14 {offsets = [0, 0], sizes = [64, 32], strides = [1, 1]} : vector<64x128xbf16> to vector<64x32xbf16>
    %cst_11 = arith.constant dense<0.000000e+00> : vector<64x64xf32>
    %17 = tpu.matmul %15, %16, %cst_11 {dimension_numbers = #tpu.dot_dimension_numbers<[1], [1], [0], [0], [0, 0, 1, 0], [], []>} : vector<64x32xbf16>, vector<64x32xbf16>, vector<64x64xf32> -> vector<64x64xf32>
    %18 = tpu.concatenate %15, %15, %15, %15, %15, %15, %15, %15 in 1 : vector<64x32xbf16>, vector<64x32xbf16>, vector<64x32xbf16>, vector<64x32xbf16>, vector<64x32xbf16>, vector<64x32xbf16>, vector<64x32xbf16>, vector<64x32xbf16> -> vector<64x256xbf16>
    %c0_12 = arith.constant 0 : index
    %c0_13 = arith.constant 0 : index
    %19 = vector.load %arg8[%c0_12, %c0_13] : memref<64x256xbf16, #tpu.memory_space<vmem>>, vector<64x256xbf16>
    %20 = arith.mulf %18, %19 : vector<64x256xbf16>
    %c0_14 = arith.constant 0 : index
    %c0_15 = arith.constant 0 : index
    %21 = vector.load %arg9[%c0_14, %c0_15] : memref<256x64xbf16, #tpu.memory_space<vmem>>, vector<256x64xbf16>
    %cst_16 = arith.constant dense<0.000000e+00> : vector<64x64xf32>
    %22 = tpu.matmul %20, %21, %cst_16 {dimension_numbers = #tpu.dot_dimension_numbers<[1], [0], [0], [1], [0, 0, 1, 1], [], []>} : vector<64x256xbf16>, vector<256x64xbf16>, vector<64x64xf32> -> vector<64x64xf32>
    %23 = arith.addf %17, %22 : vector<64x64xf32>
    %cst_17 = arith.constant dense<0xFF800000> : vector<64xf32>
    %24 = vector.multi_reduction <maximumf>, %23, %cst_17 [1] : vector<64x64xf32> to vector<64xf32>
    %25 = vector.shape_cast %24 : vector<64xf32> to vector<64x1xf32>
    %26 = vector.broadcast %25 : vector<64x1xf32> to vector<64x64xf32>
    %27 = arith.subf %23, %26 : vector<64x64xf32>
    %28 = arith.truncf %27 : vector<64x64xf32> to vector<64x64xbf16>
    %29 = math.exp %28 : vector<64x64xbf16>
    %30 = arith.extf %29 : vector<64x64xbf16> to vector<64x64xf32>
    %cst_18 = arith.constant dense<0.000000e+00> : vector<64xf32>
    %31 = vector.multi_reduction <add>, %30, %cst_18 [1] : vector<64x64xf32> to vector<64xf32>
    %32 = vector.shape_cast %31 : vector<64xf32> to vector<64x1xf32>
    %33 = tpu.reciprocal %32 {approx = true} : vector<64x1xf32> -> vector<64x1xf32>
    %cst_19 = arith.constant dense<0.000000e+00> : vector<64x32xf32>
    %34 = tpu.matmul %29, %2, %cst_19 {dimension_numbers = #tpu.dot_dimension_numbers<[1], [0], [0], [1], [0, 0, 1, 1], [], []>} : vector<64x64xbf16>, vector<64x32xbf16>, vector<64x32xf32> -> vector<64x32xf32>
    %35 = vector.broadcast %33 : vector<64x1xf32> to vector<64x32xf32>
    %36 = arith.mulf %34, %35 : vector<64x32xf32>
    %37 = arith.truncf %36 : vector<64x32xf32> to vector<64x32xbf16>
    %c0_20 = arith.constant 0 : index
    %c0_21 = arith.constant 0 : index
    %38 = vector.load %arg11[%c0_20, %c0_21] : memref<64x128xbf16, #tpu.memory_space<vmem>>, vector<64x32xbf16>
    tpu.vector_store %arg11[%c0_20, %c0_21], %37 {strides = array<i32>} : memref<64x128xbf16, #tpu.memory_space<vmem>>, vector<64x32xbf16>,
    %39 = vector.extract_strided_slice %8 {offsets = [0, 32], sizes = [64, 32], strides = [1, 1]} : vector<64x128xbf16> to vector<64x32xbf16>
    %40 = vector.extract_strided_slice %14 {offsets = [0, 32], sizes = [64, 32], strides = [1, 1]} : vector<64x128xbf16> to vector<64x32xbf16>
    %cst_22 = arith.constant dense<0.000000e+00> : vector<64x64xf32>
    %41 = tpu.matmul %39, %40, %cst_22 {dimension_numbers = #tpu.dot_dimension_numbers<[1], [1], [0], [0], [0, 0, 1, 0], [], []>} : vector<64x32xbf16>, vector<64x32xbf16>, vector<64x64xf32> -> vector<64x64xf32>
    %42 = tpu.concatenate %39, %39, %39, %39, %39, %39, %39, %39 in 1 : vector<64x32xbf16>, vector<64x32xbf16>, vector<64x32xbf16>, vector<64x32xbf16>, vector<64x32xbf16>, vector<64x32xbf16>, vector<64x32xbf16>, vector<64x32xbf16> -> vector<64x256xbf16>
    %c0_23 = arith.constant 0 : index
    %c0_24 = arith.constant 0 : index
    %43 = vector.load %arg8[%c0_23, %c0_24] : memref<64x256xbf16, #tpu.memory_space<vmem>>, vector<64x256xbf16>
    %44 = arith.mulf %42, %43 : vector<64x256xbf16>
    %c0_25 = arith.constant 0 : index
    %c0_26 = arith.constant 0 : index
    %45 = vector.load %arg9[%c0_25, %c0_26] : memref<256x64xbf16, #tpu.memory_space<vmem>>, vector<256x64xbf16>
    %cst_27 = arith.constant dense<0.000000e+00> : vector<64x64xf32>
    %46 = tpu.matmul %44, %45, %cst_27 {dimension_numbers = #tpu.dot_dimension_numbers<[1], [0], [0], [1], [0, 0, 1, 1], [], []>} : vector<64x256xbf16>, vector<256x64xbf16>, vector<64x64xf32> -> vector<64x64xf32>
    %47 = arith.addf %41, %46 : vector<64x64xf32>
    %cst_28 = arith.constant dense<0xFF800000> : vector<64xf32>
    %48 = vector.multi_reduction <maximumf>, %47, %cst_28 [1] : vector<64x64xf32> to vector<64xf32>
    %49 = vector.shape_cast %48 : vector<64xf32> to vector<64x1xf32>
    %50 = vector.broadcast %49 : vector<64x1xf32> to vector<64x64xf32>
    %51 = arith.subf %47, %50 : vector<64x64xf32>
    %52 = arith.truncf %51 : vector<64x64xf32> to vector<64x64xbf16>
    %53 = math.exp %52 : vector<64x64xbf16>
    %54 = arith.extf %53 : vector<64x64xbf16> to vector<64x64xf32>
    %cst_29 = arith.constant dense<0.000000e+00> : vector<64xf32>
    %55 = vector.multi_reduction <add>, %54, %cst_29 [1] : vector<64x64xf32> to vector<64xf32>
    %56 = vector.shape_cast %55 : vector<64xf32> to vector<64x1xf32>
    %57 = tpu.reciprocal %56 {approx = true} : vector<64x1xf32> -> vector<64x1xf32>
    %cst_30 = arith.constant dense<0.000000e+00> : vector<64x32xf32>
    %58 = tpu.matmul %53, %2, %cst_30 {dimension_numbers = #tpu.dot_dimension_numbers<[1], [0], [0], [1], [0, 0, 1, 1], [], []>} : vector<64x64xbf16>, vector<64x32xbf16>, vector<64x32xf32> -> vector<64x32xf32>
    %59 = vector.broadcast %57 : vector<64x1xf32> to vector<64x32xf32>
    %60 = arith.mulf %58, %59 : vector<64x32xf32>
    %61 = arith.truncf %60 : vector<64x32xf32> to vector<64x32xbf16>
    %c0_31 = arith.constant 0 : index
    %c32 = arith.constant 32 : index
    %62 = vector.load %arg11[%c0_31, %c32] : memref<64x128xbf16, #tpu.memory_space<vmem>>, vector<64x32xbf16>
    tpu.vector_store %arg11[%c0_31, %c32], %61 {strides = array<i32>} : memref<64x128xbf16, #tpu.memory_space<vmem>>, vector<64x32xbf16>,
    %63 = vector.extract_strided_slice %8 {offsets = [0, 64], sizes = [64, 32], strides = [1, 1]} : vector<64x128xbf16> to vector<64x32xbf16>
    %64 = vector.extract_strided_slice %14 {offsets = [0, 64], sizes = [64, 32], strides = [1, 1]} : vector<64x128xbf16> to vector<64x32xbf16>
    %cst_32 = arith.constant dense<0.000000e+00> : vector<64x64xf32>
    %65 = tpu.matmul %63, %64, %cst_32 {dimension_numbers = #tpu.dot_dimension_numbers<[1], [1], [0], [0], [0, 0, 1, 0], [], []>} : vector<64x32xbf16>, vector<64x32xbf16>, vector<64x64xf32> -> vector<64x64xf32>
    %66 = tpu.concatenate %63, %63, %63, %63, %63, %63, %63, %63 in 1 : vector<64x32xbf16>, vector<64x32xbf16>, vector<64x32xbf16>, vector<64x32xbf16>, vector<64x32xbf16>, vector<64x32xbf16>, vector<64x32xbf16>, vector<64x32xbf16> -> vector<64x256xbf16>
    %c0_33 = arith.constant 0 : index
    %c0_34 = arith.constant 0 : index
    %67 = vector.load %arg8[%c0_33, %c0_34] : memref<64x256xbf16, #tpu.memory_space<vmem>>, vector<64x256xbf16>
    %68 = arith.mulf %66, %67 : vector<64x256xbf16>
    %c0_35 = arith.constant 0 : index
    %c0_36 = arith.constant 0 : index
    %69 = vector.load %arg9[%c0_35, %c0_36] : memref<256x64xbf16, #tpu.memory_space<vmem>>, vector<256x64xbf16>
    %cst_37 = arith.constant dense<0.000000e+00> : vector<64x64xf32>
    %70 = tpu.matmul %68, %69, %cst_37 {dimension_numbers = #tpu.dot_dimension_numbers<[1], [0], [0], [1], [0, 0, 1, 1], [], []>} : vector<64x256xbf16>, vector<256x64xbf16>, vector<64x64xf32> -> vector<64x64xf32>
    %71 = arith.addf %65, %70 : vector<64x64xf32>
    %cst_38 = arith.constant dense<0xFF800000> : vector<64xf32>
    %72 = vector.multi_reduction <maximumf>, %71, %cst_38 [1] : vector<64x64xf32> to vector<64xf32>
    %73 = vector.shape_cast %72 : vector<64xf32> to vector<64x1xf32>
    %74 = vector.broadcast %73 : vector<64x1xf32> to vector<64x64xf32>
    %75 = arith.subf %71, %74 : vector<64x64xf32>
    %76 = arith.truncf %75 : vector<64x64xf32> to vector<64x64xbf16>
    %77 = math.exp %76 : vector<64x64xbf16>
    %78 = arith.extf %77 : vector<64x64xbf16> to vector<64x64xf32>
    %cst_39 = arith.constant dense<0.000000e+00> : vector<64xf32>
    %79 = vector.multi_reduction <add>, %78, %cst_39 [1] : vector<64x64xf32> to vector<64xf32>
    %80 = vector.shape_cast %79 : vector<64xf32> to vector<64x1xf32>
    %81 = tpu.reciprocal %80 {approx = true} : vector<64x1xf32> -> vector<64x1xf32>
    %cst_40 = arith.constant dense<0.000000e+00> : vector<64x32xf32>
    %82 = tpu.matmul %77, %2, %cst_40 {dimension_numbers = #tpu.dot_dimension_numbers<[1], [0], [0], [1], [0, 0, 1, 1], [], []>} : vector<64x64xbf16>, vector<64x32xbf16>, vector<64x32xf32> -> vector<64x32xf32>
    %83 = vector.broadcast %81 : vector<64x1xf32> to vector<64x32xf32>
    %84 = arith.mulf %82, %83 : vector<64x32xf32>
    %85 = arith.truncf %84 : vector<64x32xf32> to vector<64x32xbf16>
    %c0_41 = arith.constant 0 : index
    %c64 = arith.constant 64 : index
    %86 = vector.load %arg11[%c0_41, %c64] : memref<64x128xbf16, #tpu.memory_space<vmem>>, vector<64x32xbf16>
    tpu.vector_store %arg11[%c0_41, %c64], %85 {strides = array<i32>} : memref<64x128xbf16, #tpu.memory_space<vmem>>, vector<64x32xbf16>,
    %87 = vector.extract_strided_slice %8 {offsets = [0, 96], sizes = [64, 32], strides = [1, 1]} : vector<64x128xbf16> to vector<64x32xbf16>
    %88 = vector.extract_strided_slice %14 {offsets = [0, 96], sizes = [64, 32], strides = [1, 1]} : vector<64x128xbf16> to vector<64x32xbf16>
    %cst_42 = arith.constant dense<0.000000e+00> : vector<64x64xf32>
    %89 = tpu.matmul %87, %88, %cst_42 {dimension_numbers = #tpu.dot_dimension_numbers<[1], [1], [0], [0], [0, 0, 1, 0], [], []>} : vector<64x32xbf16>, vector<64x32xbf16>, vector<64x64xf32> -> vector<64x64xf32>
    %90 = tpu.concatenate %87, %87, %87, %87, %87, %87, %87, %87 in 1 : vector<64x32xbf16>, vector<64x32xbf16>, vector<64x32xbf16>, vector<64x32xbf16>, vector<64x32xbf16>, vector<64x32xbf16>, vector<64x32xbf16>, vector<64x32xbf16> -> vector<64x256xbf16>
    %c0_43 = arith.constant 0 : index
    %c0_44 = arith.constant 0 : index
    %91 = vector.load %arg8[%c0_43, %c0_44] : memref<64x256xbf16, #tpu.memory_space<vmem>>, vector<64x256xbf16>
    %92 = arith.mulf %90, %91 : vector<64x256xbf16>
    %c0_45 = arith.constant 0 : index
    %c0_46 = arith.constant 0 : index
    %93 = vector.load %arg9[%c0_45, %c0_46] : memref<256x64xbf16, #tpu.memory_space<vmem>>, vector<256x64xbf16>
    %cst_47 = arith.constant dense<0.000000e+00> : vector<64x64xf32>
    %94 = tpu.matmul %92, %93, %cst_47 {dimension_numbers = #tpu.dot_dimension_numbers<[1], [0], [0], [1], [0, 0, 1, 1], [], []>} : vector<64x256xbf16>, vector<256x64xbf16>, vector<64x64xf32> -> vector<64x64xf32>
    %95 = arith.addf %89, %94 : vector<64x64xf32>
    %cst_48 = arith.constant dense<0xFF800000> : vector<64xf32>
    %96 = vector.multi_reduction <maximumf>, %95, %cst_48 [1] : vector<64x64xf32> to vector<64xf32>
    %97 = vector.shape_cast %96 : vector<64xf32> to vector<64x1xf32>
    %98 = vector.broadcast %97 : vector<64x1xf32> to vector<64x64xf32>
    %99 = arith.subf %95, %98 : vector<64x64xf32>
    %100 = arith.truncf %99 : vector<64x64xf32> to vector<64x64xbf16>
    %101 = math.exp %100 : vector<64x64xbf16>
    %102 = arith.extf %101 : vector<64x64xbf16> to vector<64x64xf32>
    %cst_49 = arith.constant dense<0.000000e+00> : vector<64xf32>
    %103 = vector.multi_reduction <add>, %102, %cst_49 [1] : vector<64x64xf32> to vector<64xf32>
    %104 = vector.shape_cast %103 : vector<64xf32> to vector<64x1xf32>
    %105 = tpu.reciprocal %104 {approx = true} : vector<64x1xf32> -> vector<64x1xf32>
    %cst_50 = arith.constant dense<0.000000e+00> : vector<64x32xf32>
    %106 = tpu.matmul %101, %2, %cst_50 {dimension_numbers = #tpu.dot_dimension_numbers<[1], [0], [0], [1], [0, 0, 1, 1], [], []>} : vector<64x64xbf16>, vector<64x32xbf16>, vector<64x32xf32> -> vector<64x32xf32>
    %107 = vector.broadcast %105 : vector<64x1xf32> to vector<64x32xf32>
    %108 = arith.mulf %106, %107 : vector<64x32xf32>
    %109 = arith.truncf %108 : vector<64x32xf32> to vector<64x32xbf16>
    %c0_51 = arith.constant 0 : index
    %c96 = arith.constant 96 : index
    %110 = vector.load %arg11[%c0_51, %c96] : memref<64x128xbf16, #tpu.memory_space<vmem>>, vector<64x32xbf16>
    tpu.vector_store %arg11[%c0_51, %c96], %109 {strides = array<i32>} : memref<64x128xbf16, #tpu.memory_space<vmem>>, vector<64x32xbf16>,
    %c0_52 = arith.constant 0 : index
    %c0_53 = arith.constant 0 : index
    %111 = vector.load %arg11[%c0_52, %c0_53] : memref<64x128xbf16, #tpu.memory_space<vmem>>, vector<64x128xbf16>
    %c0_54 = arith.constant 0 : index
    %c0_55 = arith.constant 0 : index
    %112 = vector.load %arg6[%c0_54, %c0_55] : memref<128x32xbf16, #tpu.memory_space<vmem>>, vector<128x32xbf16>
    %cst_56 = arith.constant dense<0.000000e+00> : vector<64x32xf32>
    %113 = tpu.matmul %111, %112, %cst_56 {dimension_numbers = #tpu.dot_dimension_numbers<[1], [0], [0], [1], [0, 0, 1, 1], [], []>} : vector<64x128xbf16>, vector<128x32xbf16>, vector<64x32xf32> -> vector<64x32xf32>
    %c0_57 = arith.constant 0 : index
    %c0_58 = arith.constant 0 : index
    %114 = vector.load %arg7[%c0_57, %c0_58] : memref<1x32xf32, #tpu.memory_space<vmem>>, vector<1x32xf32>
    %115 = vector.broadcast %114 : vector<1x32xf32> to vector<64x32xf32>
    %116 = arith.addf %113, %115 : vector<64x32xf32>
    %117 = vector.shape_cast %116 : vector<64x32xf32> to vector<1x64x32xf32>
    %c0_59 = arith.constant 0 : index
    %c0_60 = arith.constant 0 : index
    %c0_61 = arith.constant 0 : index
    %118 = vector.load %arg10[%c0_59, %c0_60, %c0_61] : memref<1x64x32xf32, #tpu.memory_space<vmem>>, vector<1x64x32xf32>
    tpu.vector_store %arg10[%c0_59, %c0_60, %c0_61], %117 {strides = array<i32>} : memref<1x64x32xf32, #tpu.memory_space<vmem>>, vector<1x64x32xf32>,
    return
  }
  func.func @transform_0(%arg0: i32) -> (i32, i32, i32) {
    %c0_i32 = arith.constant 0 : i32
    %c0_i32_0 = arith.constant 0 : i32
    %c0_i32_1 = arith.constant 0 : i32
    return %arg0, %c0_i32, %c0_i32_0 : i32, i32, i32
  }
  func.func @transform_1(%arg0: i32) -> (i32, i32) {
    %c0_i32 = arith.constant 0 : i32
    %c0_i32_0 = arith.constant 0 : i32
    %c0_i32_1 = arith.constant 0 : i32
    return %c0_i32, %c0_i32_0 : i32, i32
  }
  func.func @transform_2(%arg0: i32) -> (i32, i32) {
    %c0_i32 = arith.constant 0 : i32
    %c0_i32_0 = arith.constant 0 : i32
    %c0_i32_1 = arith.constant 0 : i32
    return %c0_i32, %c0_i32_0 : i32, i32
  }
  func.func @transform_3(%arg0: i32) -> (i32, i32) {
    %c0_i32 = arith.constant 0 : i32
    %c0_i32_0 = arith.constant 0 : i32
    %c0_i32_1 = arith.constant 0 : i32
    return %c0_i32, %c0_i32_0 : i32, i32
  }
  func.func @transform_4(%arg0: i32) -> (i32, i32) {
    %c0_i32 = arith.constant 0 : i32
    %c0_i32_0 = arith.constant 0 : i32
    %c0_i32_1 = arith.constant 0 : i32
    return %c0_i32, %c0_i32_0 : i32, i32
  }
  func.func @transform_5(%arg0: i32) -> (i32, i32) {
    %c0_i32 = arith.constant 0 : i32
    %c0_i32_0 = arith.constant 0 : i32
    %c0_i32_1 = arith.constant 0 : i32
    return %c0_i32, %c0_i32_0 : i32, i32
  }
  func.func @transform_6(%arg0: i32) -> (i32, i32) {
    %c0_i32 = arith.constant 0 : i32
    %c0_i32_0 = arith.constant 0 : i32
    %c0_i32_1 = arith.constant 0 : i32
    return %c0_i32, %c0_i32_0 : i32, i32
  }
  func.func @transform_7(%arg0: i32) -> (i32, i32) {
    %c0_i32 = arith.constant 0 : i32
    %c0_i32_0 = arith.constant 0 : i32
    %c0_i32_1 = arith.constant 0 : i32
    return %c0_i32, %c0_i32_0 : i32, i32
  }
  func.func @transform_8(%arg0: i32) -> (i32, i32) {
    %c0_i32 = arith.constant 0 : i32
    %c0_i32_0 = arith.constant 0 : i32
    %c0_i32_1 = arith.constant 0 : i32
    return %c0_i32, %c0_i32_0 : i32, i32
  }
  func.func @transform_9(%arg0: i32) -> (i32, i32, i32) {
    %c0_i32 = arith.constant 0 : i32
    %c0_i32_0 = arith.constant 0 : i32
    %c0_i32_1 = arith.constant 0 : i32
    return %arg0, %c0_i32, %c0_i32_0 : i32, i32, i32
  }
}

</mosaic_0001>

<bundles_post_ra>
// kernel: tpu_custom_call.1
= control target key start
LH: loop header
LB: loop body
LE: loop exit
PB: predicated region body
PF: predicated region fallthrough
CT: control target
= control target key end

     0   :  { %s4096_s30 = smov 0   ;;  %s5155_s0 = inlined_call_operand.vmem [shape: f32[2,64,32], index: 0, kind: input, shape index: {}]   ;;  %s5156_s1 = inlined_call_operand.vmem [shape: bf16[32,128], index: 1, kind: input, shape index: {}]   ;;  %s5157_s2 = inlined_call_operand.vmem [shape: f32[1,128], index: 2, kind: input, shape index: {}]   ;;  %s5158_s3 = inlined_call_operand.vmem [shape: bf16[32,128], index: 3, kind: input, shape index: {}]   ;;  %s5159_s4 = inlined_call_operand.vmem [shape: f32[1,128], index: 4, kind: input, shape index: {}]   ;;  %s5160_s5 = inlined_call_operand.vmem [shape: bf16[128,32], index: 5, kind: input, shape index: {}]   ;;  %s5161_s6 = inlined_call_operand.vmem [shape: f32[1,32], index: 6, kind: input, shape index: {}]   ;;  %s5162_s7 = inlined_call_operand.vmem [shape: bf16[64,256], index: 7, kind: input, shape index: {}]   ;;  %s5163_s8 = inlined_call_operand.vmem [shape: bf16[256,64], index: 8, kind: input, shape index: {}]   ;;  %s5164_s9 = inlined_call_operand.vmem [shape: f32[2,64,32], index: 9, kind: output, shape index: {}]  }
   0x1 LB: > { %s3152_s10 = sadd.s32 4294967295, %s4041_s30   ;;  %p3156_p0 = scmp.ge.s32.totalorder %s4041_s30, 1  ;;  %s4041_s30 = sphi %s4096_s30, %s19_s30  }
   0x2   : > { %p287_p1 = scmp.lt.s32.totalorder %s4041_s30, 3 }
   0x4   : > { %p288_p2 = pnand %p3156_p0, %p287_p1 }
   0x6   : > { %291 = sbr.rel (%p288_p2) target bundleno = 2537 (0x9e9), region = 56 }
   0xb   : > { %v3835_v0 = vld [vmem:[%s5156_s1 + $0x8] sm:$0xff]   ;;  %p323_p3 = scmp.lt.s32.totalorder %s3152_s10, 1  ;;  %v3837_v2 = vld [vmem:[%s5156_s1] sm:$0xff]   ;;  %vm369_vm0 = vcmask 261120   ;;  %v3839_v16 = vld [vmem:[%s5163_s8 + $0x78] sm:$0xff]   ;;  %s4043_s25 = smov 96  }
   0xc   : > { %v3836_v1 = vld [vmem:[%s5158_s3 + $0x8] sm:$0xff]   ;;  %3632 = vmatprep.subr.bf16.mxu0 %v3835_v0  ;;  %v3838_v3 = vld [vmem:[%s5158_s3] sm:$0xff]   ;;  %v3840_v17 = vld [vmem:[%s5163_s8 + $0x38] sm:$0xff]   ;;  %s4044_s26 = smov 32   ;;  %s4045_s27 = smov 64   ;;  %vm592_vm1 = vcmask 785408  }
   0xd   : > { %s5212_s10 = smov (!%p323_p3, %s3152_s10), 1  ;;  %3644 = vmatprep.subr.bf16.mxu1 %v3836_v1  ;;  %3633 = vmatpush3.bf16.msra.mxu0 %v3835_v0  ;;  %v3841_v18 = vld [vmem:[%s5163_s8 + $0x70] sm:$0xff]   ;;  %v3843_v20 = vld [vmem:[%s5163_s8 + $0x68] sm:$0xff]   ;;  %v3845_v22 = vld [vmem:[%s5163_s8 + $0x60] sm:$0xff]   ;;  %vm583_vm2 = vcmask 523264   ;;  %vm1144_vm3 = vcmask 257024  }
   0xe   : > { %3645 = vmatpush3.bf16.msra.mxu1 %v3836_v1  ;;  %3634 = vmatprep.subr.bf16.mxu0 %v3837_v2  ;;  %s3350_s19 = sshll.u32 %s5212_s10, 6  ;;  %v3842_v19 = vld [vmem:[%s5163_s8 + $0x30] sm:$0xff]   ;;  %v3844_v21 = vld [vmem:[%s5163_s8 + $0x28] sm:$0xff]   ;;  %v3846_v23 = vld [vmem:[%s5163_s8 + $0x20] sm:$0xff]   ;;  %vm1736_vm4 = vcmask 519424   ;;  %vm2324_vm5 = vcmask 781824  }
   0xf   : > { %3646 = vmatprep.subr.bf16.mxu1 %v3838_v3  ;;  %s327_s22 = scalar_lea.vmem %s5155_s0, %s3350_s19  ;;  %v3847_v24 = vld [vmem:[%s5163_s8 + $0x58] sm:$0xff]   ;;  %v3849_v26 = vld [vmem:[%s5163_s8 + $0x50] sm:$0xff]   ;;  %v3851_v28 = vld [vmem:[%s5163_s8 + $0x48] sm:$0xff]   ;;  %vm2912_vm6 = vcmask 1044224   ;;  %s332_s17 = scalar_lea.vmem %s5164_s9, %s3350_s19 }
  0x10   : > { %v334_v4 = vld [vmem:[%s327_s22] sm:$0xff]  ;;  %v335_v5 = vld [vmem:[%s327_s22 + $0x8] sm:$0xff]  ;;  %v336_v6 = vld [vmem:[%s327_s22 + $0x10] sm:$0xff] }
  0x11   : > { %3635 = vmatpush3.bf16.msra.mxu0 %v3837_v2  ;;  %v4124_v7 = vpack.c.bf16 %v335_v5, %v334_v4  ;;  %v337_v8 = vld [vmem:[%s327_s22 + $0x18] sm:$0xff]  ;;  %v338_v9 = vld [vmem:[%s327_s22 + $0x20] sm:$0xff]  ;;  %v339_v10 = vld [vmem:[%s327_s22 + $0x28] sm:$0xff] }
  0x12   : > { %3647 = vmatpush3.bf16.msra.mxu1 %v3838_v3  ;;  %v4126_v11 = vpack.c.bf16 %v337_v8, %v336_v6  ;;  %v4128_v12 = vpack.c.bf16 %v339_v10, %v338_v9  ;;  %v340_v13 = vld [vmem:[%s327_s22 + $0x30] sm:$0xff]  ;;  %v341_v14 = vld [vmem:[%s327_s22 + $0x38] sm:$0xff]  ;;  %3396 = vmatprep.subr.bf16.mxu0 %v3839_v16  ;;  %v3852_v29 = vld [vmem:[%s5163_s8 + $0x8] sm:$0xff]  }
  0x13   : > { %3636 = vmatprep.mubr.msk.bf16.mxu0 %vm369_vm0, %v4124_v7  ;;  %3648 = vmatprep.mubr.msk.bf16.mxu1 %vm369_vm0, %v4124_v7  ;;  %v4142_v15 = vpack.c.bf16 %v341_v14, %v340_v13  ;;  %v3848_v25 = vld [vmem:[%s5163_s8 + $0x18] sm:$0xff]   ;;  %v3850_v27 = vld [vmem:[%s5163_s8 + $0x10] sm:$0xff]   ;;  %v3853_v32 = vld [vmem:[%s5163_s8 + $0x40] sm:$0xff]  }
  0x14   : > { %3637 = vmatmul.mubr.msk.bf16.vlgmr.msra.gmra.mxu0 %vm369_vm0, %v4126_v11  ;;  %v3854_v33 = vld [vmem:[%s5163_s8] sm:$0xff]   ;;  %v3858_v40 = vld [vmem:[%s5163_s8 + $0x78] sm:$0xff]  }
  0x15   : > { %3649 = vmatmul.mubr.msk.bf16.vlgmr.msra.gmra.mxu1 %vm369_vm0, %v4126_v11  ;;  %3640 = vmatprep.mubr.msk.bf16.mxu0 %vm369_vm0, %v4128_v12  ;;  %v3161_v38 = vld [vmem:[%s5157_s2] ss:$0 sm:$0xff] }
  0x16   : > { %3652 = vmatprep.mubr.msk.bf16.mxu1 %vm369_vm0, %v4128_v12  ;;  %3397 = vmatpush3.bf16.msra.mxu0 %v3840_v17  ;;  %v3168_v45 = vld [vmem:[%s5159_s4] ss:$0 sm:$0xff] }
  0x17   : > { %3398 = vmatprep.subr.bf16.mxu0 %v3841_v18 }
  0x1a   : > { %3399 = vmatpush3.bf16.msra.mxu0 %v3842_v19 }
  0x1b   : > { %3400 = vmatprep.subr.bf16.mxu0 %v3843_v20 }
  0x1c   : > { %3641 = vmatmul.mubr.msk.bf16.gmra.mxu0 %vm369_vm0, %v4142_v15 }
  0x1d   : > { %3653 = vmatmul.mubr.msk.bf16.gmra.mxu1 %vm369_vm0, %v4142_v15 }
  0x1e   : > { %3401 = vmatpush3.bf16.msra.mxu0 %v3844_v21  ;;  %v4284_v21 = vld [vmem:[%s5162_s7] ss:$8 sps:$4 sm:$0xff]  }
  0x1f   : > { %3402 = vmatprep.subr.bf16.mxu0 %v3845_v22  ;;  %v4289_v22 = vld [vmem:[%s5162_s7 + $0x4] ss:$8 sps:$4 sm:$0xff]  }
  0x22   : > { %3403 = vmatpush3.bf16.msra.mxu0 %v3846_v23 }
  0x23   : > { %3404 = vmatprep.subr.bf16.mxu0 %v3847_v24 }
  0x26   : > { %3405 = vmatpush3.bf16.msra.mxu0 %v3848_v25 }
  0x27   : > { %3406 = vmatprep.subr.bf16.mxu0 %v3849_v26 }
  0x2a   : > { %3407 = vmatpush3.bf16.msra.mxu0 %v3850_v27 }
  0x2b   : > { %3408 = vmatprep.subr.bf16.mxu0 %v3851_v28 }
  0x2e   : > { %3409 = vmatpush3.bf16.msra.mxu0 %v3852_v29 }
  0x2f   : > { %3410 = vmatprep.subr.bf16.mxu0 %v3853_v32  ;;  %v3859_v32 = vld [vmem:[%s5163_s8 + $0x38] sm:$0xff]  }
  0x32   : > { %3411 = vmatpush3.bf16.msra.mxu0 %v3854_v33 }
  0x33   : > { %3452 = vmatprep.subr.bf16.mxu0 %v3858_v40 }
  0xd4   : > { %v3638_v30 = vpop.f32.mrf.mxu0 }
  0xd5   : > { %v3650_v31 = vpop.f32.mrf.mxu1  ;;  %v425_v50 = vadd.f32 %v3638_v30, %v3161_v38 }
  0xd6   : > { %v416_v34 = vpop.f32.mrf.mxu0  ;;  %v517_v5 = vadd.f32 %v3650_v31, %v3168_v45 }
  0xd7   : > { %v508_v35 = vpop.f32.mrf.mxu1  ;;  %v417_v41 = vadd.f32 %v3161_v38, %v416_v34 }
  0xd8   : > { %v3639_v36 = vpop.f32.mrf.mxu0  ;;  %v509_v13 = vadd.f32 %v3168_v45, %v508_v35  ;;  %v4321_v35 = vld [vmem:[%s5162_s7 + $0x14] ss:$8 sps:$4 sm:$0xff]  }
  0xd9   : > { %v3651_v37 = vpop.f32.mrf.mxu1  ;;  %v428_v46 = vadd.f32 %v3639_v36, %v3161_v38  ;;  %v3862_v36 = vld [vmem:[%s5163_s8 + $0x70] sm:$0xff]  }
  0xda   : > { %v419_v39 = vpop.f32.mrf.mxu0  ;;  %v520_v6 = vadd.f32 %v3651_v37, %v3168_v45 }
  0xdb   : > { %v420_v42 = vadd.f32 %v3161_v38, %v419_v39  ;;  %v511_v43 = vpop.f32.mrf.mxu1  ;;  %v4213_v54 = vpack.c.bf16 %v428_v46, %v425_v50  ;;  %v3865_v50 = vld [vmem:[%s5163_s8 + $0x68] sm:$0xff]  }
  0xdc   : > { %v3642_v44 = vpop.f32.mrf.mxu0  ;;  %v4239_v9 = vpack.c.bf16 %v520_v6, %v517_v5  ;;  %v512_v14 = vadd.f32 %v3168_v45, %v511_v43  ;;  %v3870_v6 = vld [vmem:[%s5163_s8 + $0x20] sm:$0xff]  }
  0xdd   : > { %v4205_v47 = vpack.c.bf16 %v420_v42, %v417_v41  ;;  %v3654_v48 = vpop.f32.mrf.mxu1  ;;  %v441_v2 = vadd.f32 %v3642_v44, %v3161_v38  ;;  %v4340_v42 = vld [vmem:[%s5162_s7 + $0x10] ss:$8 sps:$4 sm:$0xff]  }
  0xde   : > { %v432_v49 = vpop.f32.mrf.mxu0  ;;  %v533_v52 = vadd.f32 %v3654_v48, %v3168_v45  ;;  %v4253_v16 = vpack.c.bf16 %v512_v14, %v509_v13  ;;  %v866_v17 = vsel %vm369_vm0, %v4239_v9, 0  ;;  %v4405_v14 = vld [vmem:[%s5162_s7 + $0x20] ss:$8 sps:$4 sm:$0xff]  }
  0xdf   : > { %v524_v51 = vpop.f32.mrf.mxu1  ;;  %563 = vrot.lane.b32.xlu1 %v4205_v47, %s4043_s25  ;;  %547 = vrot.lane.b32.xlu0 %v4205_v47, %s4044_s26  ;;  %v433_v59 = vadd.f32 %v3161_v38, %v432_v49 }
  0xe0   : > { %3664 = vmatprep.mubr.msk.bf16.mxu1 %vm369_vm0, %v4205_v47  ;;  %v3643_v53 = vpop.f32.mrf.mxu0  ;;  %v525_v56 = vadd.f32 %v3168_v45, %v524_v51  ;;  %v863_v18 = vsel %vm369_vm0, %v4253_v16, 0 }
  0xe1   : > { %v3655_v55 = vpop.f32.mrf.mxu1  ;;  %v444_v3 = vadd.f32 %v3643_v53, %v3161_v38 }
  0xe2   : > { %v536_v57 = vadd.f32 %v3655_v55, %v3168_v45  ;;  %v435_v58 = vpop.f32.mrf.mxu0 }
  0xe3   : > { %549 = vrot.lane.b32.xlu1 %v4213_v54, %s4044_s26  ;;  %555 = vrot.lane.b32.xlu0 %v4205_v47, %s4045_s27  ;;  %v436_v60 = vadd.f32 %v3161_v38, %v435_v58  ;;  %v527_v61 = vpop.f32.mrf.mxu1  ;;  %v4235_v8 = vpack.c.bf16 %v444_v3, %v441_v2  ;;  %v4377_v58 = vld [vmem:[%s5162_s7 + $0x24] ss:$8 sps:$4 sm:$0xff]  }
  0xe4   : > { %v4219_v62 = vpack.c.bf16 %v536_v57, %v533_v52  ;;  %v528_v63 = vadd.f32 %v3168_v45, %v527_v61  ;;  %v3863_v45 = vld [vmem:[%s5163_s8 + $0x30] sm:$0xff]   ;;  %v3866_v57 = vld [vmem:[%s5163_s8 + $0x28] sm:$0xff]   ;;  %v3869_v61 = vld [vmem:[%s5163_s8 + $0x60] sm:$0xff]  }
  0xe5   : > { %v4227_v4 = vpack.c.bf16 %v436_v60, %v433_v59  ;;  %5175 = vst [vmem:[#allocation3_spill] sm:$0xff] %v4235_v8 }
  0xe6   : > { %3808 = vmatprep.subr.msk.bf16.mxu1 %vm369_vm0, %v4219_v62  ;;  %v872_v0 = vsel %vm369_vm0, %v4219_v62, 0  ;;  %v4225_v1 = vpack.c.bf16 %v528_v63, %v525_v56 }
  0xe7   : > { %3657 = vmatpush3.bf16.xpose.msra.mxu1 %v872_v0  ;;  %565 = vrot.lane.b32.xlu1 %v4213_v54, %s4043_s25 }
  0xe8   : > { %557 = vrot.lane.b32.xlu0 %v4213_v54, %s4045_s27  ;;  %3809 = vmatprep.subr.msk.bf16.mxu1 %vm369_vm0, %v4225_v1  ;;  %v869_v10 = vsel %vm369_vm0, %v4225_v1, 0 }
  0xeb   : > { %559 = vrot.lane.b32.xlu1 %v4227_v4, %s4045_s27 }
  0xec   : > { %551 = vrot.lane.b32.xlu0 %v4227_v4, %s4044_s26 }
  0xef   : > { %3659 = vmatpush3.bf16.xpose.msra.mxu1 %v869_v10  ;;  %553 = vrot.lane.b32.xlu1 %v4235_v8, %s4044_s26 }
  0xf0   : > { %567 = vrot.lane.b32.xlu0 %v4227_v4, %s4043_s25  ;;  %3810 = vmatprep.subr.msk.bf16.mxu1 %vm369_vm0, %v4239_v9 }
  0xf3   : > { %569 = vrot.lane.b32.xlu1 %v4235_v8, %s4043_s25 }
  0xf4   : > { %561 = vrot.lane.b32.xlu0 %v4235_v8, %s4045_s27 }
  0xf7   : > { %3661 = vmatpush3.bf16.xpose.msra.mxu1 %v866_v17  ;;  %v3872_v17 = vld [vmem:[%s5163_s8 + $0x58] sm:$0xff]  }
  0xf8   : > { %3811 = vmatprep.subr.msk.bf16.mxu1 %vm369_vm0, %v4253_v16 }
  0xff   : > { %3663 = vmatpush3.bf16.xpose.msra.mxu1 %v863_v18 }
 0x100   : > { %3672 = vmatprep.subr.bf16.mxu1 %v4142_v15 }
 0x106   : > { %3665 = vmatmul.mubr.msk.bf16.vlgmr.msra.gmra.mxu1 %vm369_vm0, %v4213_v54 }
 0x107   : > { %3668 = vmatprep.mubr.msk.bf16.mxu1 %vm369_vm0, %v4227_v4  ;;  %3673 = vmatpush3.bf16.msra.mxu1 %v4142_v15 }
 0x108   : > { %3674 = vmatprep.subr.bf16.mxu1 %v4128_v12 }
 0x10b   : > { %3675 = vmatpush3.bf16.msra.mxu1 %v4128_v12 }
 0x10c   : > { %3676 = vmatprep.subr.bf16.mxu1 %v4126_v11 }
 0x10e   : > { %3669 = vmatmul.mubr.msk.bf16.gmra.mxu1 %vm369_vm0, %v4235_v8 }
 0x10f   : > { %3677 = vmatpush3.bf16.msra.mxu1 %v4126_v11 }
 0x110   : > { %3678 = vmatprep.subr.bf16.mxu1 %v4124_v7 }
 0x113   : > { %3679 = vmatpush3.bf16.msra.mxu1 %v4124_v7 }
 0x151   : > { %v4277_v19 = vpop.permute.xlu1 %563  ;;  %v4279_v20 = vpop.permute.xlu0 %547 }
 0x152   : > { %v573_v25 = vsel %vm369_vm0, %v4205_v47, %v4279_v20 }
 0x155   : > { %v4291_v23 = vpop.permute.xlu1 %549  ;;  %v4293_v24 = vpop.permute.xlu0 %555 }
 0x156   : > { %v585_v26 = vsel %vm583_vm2, %v573_v25, %v4293_v24  ;;  %v1745_v27 = vsel %vm369_vm0, %v4293_v24, %v4277_v19  ;;  %v576_v40 = vsel %vm369_vm0, %v4213_v54, %v4291_v23 }
 0x157   : > { %v594_v28 = vsel %vm592_vm1, %v585_v26, %v4277_v19  ;;  %v1749_v29 = vsel %vm583_vm2, %v1745_v27, %v4205_v47  ;;  %v4422_v27 = vld [vmem:[%s5162_s7 + $0x34] ss:$8 sps:$4 sm:$0xff]  }
 0x158   : > { %v653_v30 = vmul.bf16 %v4284_v21, %v594_v28  ;;  %v654_v31 = vmul.bf16 %v4289_v22, %v594_v28  ;;  %v4314_v33 = vsel %vm592_vm1, %v1749_v29, %v4279_v20 }
 0x159   : > { %v4316_v34 = vpop.permute.xlu1 %565 }
 0x15a   : > { %v4330_v39 = vpop.permute.xlu0 %557  ;;  %821 = vmatprep.mubr.bf16.mxu0 %v654_v31 }
 0x15b   : > { %822 = vmatmul.mubr.bf16.vlgmr.msra.gmra.mxu0 %v653_v30  ;;  %v587_v41 = vsel %vm583_vm2, %v576_v40, %v4330_v39  ;;  %v1746_v43 = vsel %vm369_vm0, %v4330_v39, %v4316_v34  ;;  %v4431_v30 = vld [vmem:[%s5162_s7 + $0x30] ss:$8 sps:$4 sm:$0xff]  }
 0x15c   : > { %3453 = vmatpush3.bf16.msra.mxu0 %v3859_v32  ;;  %v597_v44 = vsel %vm592_vm1, %v587_v41, %v4316_v34  ;;  %v1750_v46 = vsel %vm583_vm2, %v1746_v43, %v4213_v54  ;;  %v3875_v40 = vld [vmem:[%s5163_s8 + $0x18] sm:$0xff]  }
 0x15d   : > { %v4352_v48 = vpop.permute.xlu1 %559  ;;  %v656_v49 = vmul.bf16 %v4321_v35, %v597_v44  ;;  %3454 = vmatprep.subr.bf16.mxu0 %v3862_v36  ;;  %v4362_v52 = vsel %vm592_vm1, %v1750_v46, %v4291_v23  ;;  %v655_v60 = vmul.bf16 %v4340_v42, %v597_v44  ;;  %v3876_v44 = vld [vmem:[%s5163_s8 + $0x50] sm:$0xff]  }
 0x15e   : > { %v4358_v51 = vpop.permute.xlu0 %551 }
 0x15f   : > { %829 = vmatprep.mubr.bf16.mxu0 %v656_v49  ;;  %v579_v53 = vsel %vm369_vm0, %v4227_v4, %v4358_v51  ;;  %v1153_v49 = vsel %vm369_vm0, %v4277_v19, %v4205_v47 }
 0x160   : > { %3455 = vmatpush3.bf16.msra.mxu0 %v3863_v45  ;;  %v589_v0 = vsel %vm583_vm2, %v579_v53, %v4352_v48 }
 0x161   : > { %v4379_v59 = vpop.permute.xlu1 %553  ;;  %3456 = vmatprep.subr.bf16.mxu0 %v3865_v50 }
 0x162   : > { %v4385_v63 = vpop.permute.xlu0 %567  ;;  %v582_v26 = vsel %vm369_vm0, %v4235_v8, %v4379_v59 }
 0x163   : > { %830 = vmatmul.mubr.bf16.gmra.mxu0 %v655_v60  ;;  %v600_v2 = vsel %vm592_vm1, %v589_v0, %v4385_v63  ;;  %v1747_v3 = vsel %vm369_vm0, %v4352_v48, %v4385_v63  ;;  %v3879_v60 = vld [vmem:[%s5163_s8 + $0x48] sm:$0xff]  }
 0x164   : > { %3457 = vmatpush3.bf16.msra.mxu0 %v3866_v57  ;;  %v658_v5 = vmul.bf16 %v4377_v58, %v600_v2  ;;  %v1751_v10 = vsel %vm583_vm2, %v1747_v3, %v4227_v4  ;;  %v657_v43 = vmul.bf16 %v4405_v14, %v600_v2  ;;  %v3877_v57 = vld [vmem:[%s5163_s8 + $0x10] sm:$0xff]   ;;  %v3880_v2 = vld [vmem:[%s5163_s8 + $0x8] sm:$0xff]  }
 0x165   : > { %v4400_v13 = vpop.permute.xlu1 %569  ;;  %3458 = vmatprep.subr.bf16.mxu0 %v3869_v61  ;;  %v4412_v18 = vsel %vm592_vm1, %v1751_v10, %v4358_v51  ;;  %v1157_v61 = vsel %vm583_vm2, %v1153_v49, %v4279_v20 }
 0x166   : > { %5176 = vst [vmem:[#allocation4_spill] sm:$0xff] %v4400_v13  ;;  %837 = vmatprep.mubr.bf16.mxu0 %v658_v5  ;;  %v4414_v25 = vpop.permute.xlu0 %561  ;;  %v1161_v0 = vsel %vm592_vm1, %v1157_v61, %v4293_v24  ;;  %v3881_v5 = vld [vmem:[%s5163_s8 + $0x40] sm:$0xff]  }
 0x167   : > { %v591_v29 = vsel %vm583_vm2, %v582_v26, %v4414_v25  ;;  %v1748_v32 = vsel %vm369_vm0, %v4414_v25, %v4400_v13  ;;  %v1218_v10 = vmul.bf16 %v4289_v22, %v1161_v0 }
 0x168   : > { %3459 = vmatpush3.bf16.msra.mxu0 %v3870_v6  ;;  %v603_v36 = vsel %vm592_vm1, %v591_v29, %v4400_v13  ;;  %v1752_v41 = vsel %vm583_vm2, %v1748_v32, %v4235_v8  ;;  %v1154_v6 = vsel %vm369_vm0, %v4316_v34, %v4213_v54  ;;  %v1217_v32 = vmul.bf16 %v4284_v21, %v1161_v0 }
 0x169   : > { %3460 = vmatprep.subr.bf16.mxu0 %v3872_v17  ;;  %v660_v45 = vmul.bf16 %v4422_v27, %v603_v36  ;;  %v4452_v46 = vsel %vm592_vm1, %v1752_v41, %v4379_v59  ;;  %v659_v3 = vmul.bf16 %v4431_v30, %v603_v36  ;;  %v3882_v17 = vld [vmem:[%s5163_s8] sm:$0xff]   ;;  %v1158_v26 = vsel %vm583_vm2, %v1154_v6, %v4291_v23 }
 0x16a   : > { %v1163_v29 = vsel %vm592_vm1, %v1158_v26, %v4330_v39  ;;  %v1155_v36 = vsel %vm369_vm0, %v4385_v63, %v4227_v4 }
 0x16b   : > { %838 = vmatmul.mubr.bf16.gmra.mxu0 %v657_v43  ;;  %v1159_v41 = vsel %vm583_vm2, %v1155_v36, %v4358_v51 }
 0x16c   : > { %845 = vmatprep.mubr.bf16.mxu0 %v660_v45  ;;  %3461 = vmatpush3.bf16.msra.mxu0 %v3875_v40  ;;  %v1220_v40 = vmul.bf16 %v4321_v35, %v1163_v29  ;;  %v1165_v43 = vsel %vm592_vm1, %v1159_v41, %v4352_v48  ;;  %v1156_v45 = vsel %vm369_vm0, %v4400_v13, %v4235_v8 }
 0x16d   : > { %3462 = vmatprep.subr.bf16.mxu0 %v3876_v44  ;;  %v1219_v44 = vmul.bf16 %v4340_v42, %v1163_v29  ;;  %v1222_v49 = vmul.bf16 %v4377_v58, %v1165_v43  ;;  %v1221_v61 = vmul.bf16 %v4405_v14, %v1165_v43 }
 0x170   : > { %3463 = vmatpush3.bf16.msra.mxu0 %v3877_v57  ;;  %v1160_v57 = vsel %vm583_vm2, %v1156_v45, %v4379_v59 }
 0x171   : > { %3464 = vmatprep.subr.bf16.mxu0 %v3879_v60  ;;  %v1167_v60 = vsel %vm592_vm1, %v1160_v57, %v4414_v25 }
 0x172   : > { %v1224_v0 = vmul.bf16 %v4422_v27, %v1167_v60 }
 0x173   : > { %846 = vmatmul.mubr.bf16.gmra.mxu0 %v659_v3 }
 0x174   : > { %3465 = vmatpush3.bf16.msra.mxu0 %v3880_v2  ;;  %1385 = vmatprep.mubr.bf16.mxu0 %v1218_v10  ;;  %v1223_v2 = vmul.bf16 %v4431_v30, %v1167_v60 }
 0x175   : > { %3466 = vmatprep.subr.bf16.mxu0 %v3881_v5 }
 0x178   : > { %3467 = vmatpush3.bf16.msra.mxu0 %v3882_v17 }
 0x17b   : > { %1386 = vmatmul.mubr.bf16.vlgmr.msra.gmra.mxu0 %v1217_v32 }
 0x17c   : > { %1393 = vmatprep.mubr.bf16.mxu0 %v1220_v40 }
 0x183   : > { %1394 = vmatmul.mubr.bf16.gmra.mxu0 %v1219_v44 }
 0x184   : > { %1401 = vmatprep.mubr.bf16.mxu0 %v1222_v49 }
 0x18b   : > { %1402 = vmatmul.mubr.bf16.gmra.mxu0 %v1221_v61 }
 0x18c   : > { %1409 = vmatprep.mubr.bf16.mxu0 %v1224_v0 }
 0x193   : > { %1410 = vmatmul.mubr.bf16.gmra.mxu0 %v1223_v2 }
 0x194   : > { %3728 = vmatprep.mubr.msk.bf16.mxu0 %vm369_vm0, %v4293_v24 }
 0x1c6   : > { %v3666_v3 = vpop.f32.mrf.mxu1 }
 0x1c8   : > { %v908_v5 = vpop.f32.mrf.mxu1 }
 0x1ca   : > { %v3667_v26 = vpop.f32.mrf.mxu1 }
 0x1cc   : > { %v911_v43 = vpop.f32.mrf.mxu1 }
 0x1ce   : > { %v3670_v61 = vpop.f32.mrf.mxu1 }
 0x21b   : > { %v3412_v6 = vpop.f32.mrf.mxu0 }
 0x21d   : > { %v3413_v10 = vpop.f32.mrf.mxu0 }
 0x21e   : > { %v3414_v17 = vadd.f32 %v3413_v10, %v3412_v6 }
 0x21f   : > { %v3415_v29 = vpop.f32.mrf.mxu0 }
 0x220   : > { %v909_v32 = vadd.f32 %v3414_v17, %v908_v5  ;;  %v924_v17 = vpop.f32.mrf.mxu1 }
 0x221   : > { %v3416_v36 = vpop.f32.mrf.mxu0 }
 0x222   : > { %v3417_v40 = vadd.f32 %v3416_v36, %v3415_v29  ;;  %v939_v41 = vsel %vm583_vm2, %v909_v32, -inf }
 0x223   : > { %v3418_v44 = vpop.f32.mrf.mxu0  ;;  %940 = vmax.xlane.f32.xlu0 %v939_v41 }
 0x224   : > { %v912_v45 = vadd.f32 %v3417_v40, %v911_v43  ;;  %v3671_v40 = vpop.f32.mrf.mxu1 }
 0x225   : > { %v3419_v49 = vpop.f32.mrf.mxu0 }
 0x226   : > { %v3420_v57 = vadd.f32 %v3419_v49, %v3418_v44  ;;  %v942_v60 = vsel %vm583_vm2, %v912_v45, -inf  ;;  %v927_v50 = vpop.f32.mrf.mxu1 }
 0x227   : > { %v3421_v0 = vpop.f32.mrf.mxu0  ;;  %943 = vmax.xlane.f32.xlu1 %v942_v60 }
 0x228   : > { %v917_v2 = vadd.f32 %v3666_v3, %v3420_v57 }
 0x229   : > { %v3422_v6 = vpop.f32.mrf.mxu0 }
 0x22a   : > { %v3423_v10 = vadd.f32 %v3422_v6, %v3421_v0  ;;  %v945_v5 = vsel %vm583_vm2, %v917_v2, -inf }
 0x22b   : > { %v3424_v29 = vpop.f32.mrf.mxu0  ;;  %946 = vmax.xlane.f32.xlu0 %v945_v5 }
 0x22c   : > { %v920_v36 = vadd.f32 %v3667_v26, %v3423_v10 }
 0x22d   : > { %v3425_v53 = vpop.f32.mrf.mxu0 }
 0x22e   : > { %v948_v41 = vsel %vm583_vm2, %v920_v36, -inf }
 0x22f   : > { %v3427_v43 = vpop.f32.mrf.mxu0  ;;  %949 = vmax.xlane.f32.xlu0 %v948_v41  ;;  %v3426_v41 = vadd.f32 %v3425_v53, %v3424_v29 }
 0x231   : > { %v3428_v44 = vpop.f32.mrf.mxu0 }
 0x232   : > { %v3429_v49 = vadd.f32 %v3428_v44, %v3427_v43 }
 0x233   : > { %v3430_v31 = vpop.f32.mrf.mxu0 }
 0x234   : > { %v928_v60 = vadd.f32 %v3429_v49, %v927_v50  ;;  %v925_v50 = vadd.f32 %v3426_v41, %v924_v17 }
 0x235   : > { %v3431_v3 = vpop.f32.mrf.mxu0 }
 0x236   : > { %v954_v57 = vsel %vm583_vm2, %v928_v60, -inf  ;;  %v3432_v43 = vadd.f32 %v3431_v3, %v3430_v31  ;;  %v951_v44 = vsel %vm583_vm2, %v925_v50, -inf }
 0x237   : > { %v3433_v0 = vpop.f32.mrf.mxu0  ;;  %955 = vmax.xlane.f32.xlu0 %v954_v57 }
 0x238   : > { %1428 = vrot.lane.b32.xlu1 %v4219_v62, %s4043_s25  ;;  %v933_v49 = vadd.f32 %v3670_v61, %v3432_v43 }
 0x239   : > { %v3434_v26 = vpop.f32.mrf.mxu0 }
 0x23a   : > { %v3435_v6 = vadd.f32 %v3434_v26, %v3433_v0  ;;  %v957_v57 = vsel %vm583_vm2, %v933_v49, -inf }
 0x23c   : > { %v936_v10 = vadd.f32 %v3671_v40, %v3435_v6 }
 0x23e   : > { %v960_v5 = vsel %vm583_vm2, %v936_v10, -inf }
 0x23f   : > { %961 = vmax.xlane.f32.xlu0 %v960_v5 }
 0x255   : > { %1426 = vrot.lane.b32.xlu0 %v4225_v1, %s4043_s25 }
 0x25c   : > { %952 = vmax.xlane.f32.xlu1 %v951_v44 }
 0x260   : > { %958 = vmax.xlane.f32.xlu1 %v957_v57 }
 0x271   : > { %1424 = vrot.lane.b32.xlu1 %v4239_v9, %s4043_s25 }
 0x275   : > { %1422 = vrot.lane.b32.xlu1 %v4253_v16, %s4043_s25 }
 0x2ac   : > { %v941_v40 = vpop.xlane.xlu0 %940 }
 0x2ad   : > { %v963_v29 = vsub.f32 %v909_v32, %v941_v40 }
 0x2b0   : > { %v944_v53 = vpop.xlane.xlu1 %943 }
 0x2b1   : > { %v964_v0 = vsub.f32 %v912_v45, %v944_v53 }
 0x2b3   : > { %v971_v26 = vpack.c.bf16 %v964_v0, %v963_v29 }
 0x2b4   : > { %v1429_v31 = vpop.permute.xlu1 %1428  ;;  %v947_v17 = vpop.xlane.xlu0 %946 }
 0x2b5   : > { %v976_v3 = vmul.bf16 1069105081, %v971_v26  ;;  %3812 = vmatprep.subr.msk.bf16.mxu1 %vm369_vm0, %v1429_v31  ;;  %v965_v6 = vsub.f32 %v917_v2, %v947_v17  ;;  %v1448_v40 = vsel %vm369_vm0, %v1429_v31, 0 }
 0x2b7   : > { %3939 = vpow.bf16 %v976_v3 }
 0x2b8   : > { %v950_v61 = vpop.xlane.xlu0 %949 }
 0x2b9   : > { %v966_v5 = vsub.f32 %v920_v36, %v950_v61 }
 0x2bb   : > { %v972_v41 = vpack.c.bf16 %v966_v5, %v965_v6 }
 0x2bd   : > { %v979_v43 = vmul.bf16 1069105081, %v972_v41 }
 0x2bf   : > { %3941 = vpow.bf16 %v979_v43 }
 0x2c0   : > { %v956_v57 = vpop.xlane.xlu0 %955 }
 0x2c1   : > { %v968_v29 = vsub.f32 %v928_v60, %v956_v57 }
 0x2c5   : > { %v4529_v44 = vpop.eup %3939 }
 0x2c6   : > { %5177 = vst [vmem:[#allocation5_spill] sm:$0xff] %v4529_v44  ;;  %3680 = vmatprep.mubr.msk.bf16.mxu1 %vm583_vm2, %v4529_v44 }
 0x2c8   : > { %v962_v32 = vpop.xlane.xlu0 %961 }
 0x2c9   : > { %v970_v3 = vsub.f32 %v936_v10, %v962_v32 }
 0x2cc   : > { %v1427_v53 = vpop.permute.xlu0 %1426 }
 0x2cd   : > { %v4533_v45 = vpop.eup %3941  ;;  %v1445_v2 = vsel %vm369_vm0, %v1427_v53, 0 }
 0x2ce   : > { %5178 = vst [vmem:[#allocation6_spill] sm:$0xff] %v4533_v45  ;;  %3681 = vmatmul.mubr.msk.bf16.vlgmr.msra.gmra.mxu1 %vm583_vm2, %v4533_v45 }
 0x2cf   : > { %3689 = vmatpush3.bf16.xpose.msra.mxu1 %v1448_v40 }
 0x2d0   : > { %3813 = vmatprep.subr.msk.bf16.mxu1 %vm369_vm0, %v1427_v53 }
 0x2d7   : > { %3691 = vmatpush3.bf16.xpose.msra.mxu1 %v1445_v2 }
 0x2e5   : > { %v953_v36 = vpop.xlane.xlu1 %952 }
 0x2e6   : > { %v967_v0 = vsub.f32 %v925_v50, %v953_v36 }
 0x2e8   : > { %v973_v26 = vpack.c.bf16 %v968_v29, %v967_v0 }
 0x2e9   : > { %v959_v17 = vpop.xlane.xlu1 %958 }
 0x2ea   : > { %v982_v61 = vmul.bf16 1069105081, %v973_v26  ;;  %v969_v6 = vsub.f32 %v933_v49, %v959_v17  ;;  %v3468_v49 = vpop.f32.mrf.mxu0 }
 0x2ec   : > { %3943 = vpow.bf16 %v982_v61  ;;  %v974_v31 = vpack.c.bf16 %v970_v3, %v969_v6  ;;  %v3469_v57 = vpop.f32.mrf.mxu0 }
 0x2ed   : > { %v1425_v5 = vpop.permute.xlu1 %1424 }
 0x2ee   : > { %v985_v41 = vmul.bf16 1069105081, %v974_v31  ;;  %v1442_v43 = vsel %vm369_vm0, %v1425_v5, 0  ;;  %3814 = vmatprep.subr.msk.bf16.mxu1 %vm369_vm0, %v1425_v5  ;;  %v3471_v32 = vpop.f32.mrf.mxu0 }
 0x2ef   : > { %3693 = vmatpush3.bf16.xpose.msra.mxu1 %v1442_v43 }
 0x2f0   : > { %3945 = vpow.bf16 %v985_v41  ;;  %v3472_v53 = vpop.f32.mrf.mxu0 }
 0x2f1   : > { %v1423_v40 = vpop.permute.xlu1 %1422 }
 0x2f2   : > { %3815 = vmatprep.subr.msk.bf16.mxu1 %vm369_vm0, %v1423_v40  ;;  %v1439_v60 = vsel %vm369_vm0, %v1423_v40, 0  ;;  %v3474_v2 = vpop.f32.mrf.mxu0 }
 0x2f4   : > { %v3475_v36 = vpop.f32.mrf.mxu0 }
 0x2f5   : > { %v3476_v55 = vadd.f32 %v3475_v36, %v3474_v2 }
 0x2f6   : > { %v3477_v29 = vpop.f32.mrf.mxu0 }
 0x2f7   : > { %3695 = vmatpush3.bf16.xpose.msra.mxu1 %v1439_v60 }
 0x2f8   : > { %3704 = vmatprep.subr.bf16.mxu1 %v4142_v15  ;;  %v3478_v0 = vpop.f32.mrf.mxu0 }
 0x2f9   : > { %v3479_v44 = vadd.f32 %v3478_v0, %v3477_v29 }
 0x2fa   : > { %v4545_v10 = vpop.eup %3943  ;;  %v3480_v17 = vpop.f32.mrf.mxu0 }
 0x2fb   : > { %5179 = vst [vmem:[#allocation7_spill] sm:$0xff] %v4545_v10  ;;  %3684 = vmatprep.mubr.msk.bf16.mxu1 %vm583_vm2, %v4545_v10 }
 0x2fc   : > { %v3481_v61 = vpop.f32.mrf.mxu0 }
 0x2fd   : > { %v3482_v29 = vadd.f32 %v3481_v61, %v3480_v17 }
 0x2fe   : > { %v4549_v50 = vpop.eup %3945  ;;  %v3483_v31 = vpop.f32.mrf.mxu0 }
 0x2ff   : > { %5180 = vst [vmem:[#allocation8_spill] sm:$0xff] %v4549_v50  ;;  %3685 = vmatmul.mubr.msk.bf16.gmra.mxu1 %vm583_vm2, %v4549_v50 }
 0x300   : > { %3696 = vmatprep.mubr.msk.bf16.mxu1 %vm369_vm0, %v4277_v19  ;;  %v3484_v41 = vpop.f32.mrf.mxu0 }
 0x302   : > { %v3486_v60 = vpop.f32.mrf.mxu0 }
 0x304   : > { %v3487_v37 = vpop.f32.mrf.mxu0 }
 0x307   : > { %3697 = vmatmul.mubr.msk.bf16.vlgmr.msra.gmra.mxu1 %vm369_vm0, %v4316_v34 }
 0x308   : > { %3700 = vmatprep.mubr.msk.bf16.mxu1 %vm369_vm0, %v4385_v63  ;;  %3705 = vmatpush3.bf16.msra.mxu1 %v4142_v15 }
 0x309   : > { %3706 = vmatprep.subr.bf16.mxu1 %v4128_v12 }
 0x30c   : > { %3707 = vmatpush3.bf16.msra.mxu1 %v4128_v12 }
 0x30d   : > { %3708 = vmatprep.subr.bf16.mxu1 %v4126_v11 }
 0x30f   : > { %3701 = vmatmul.mubr.msk.bf16.gmra.mxu1 %vm369_vm0, %v4400_v13 }
 0x310   : > { %3709 = vmatpush3.bf16.msra.mxu1 %v4126_v11 }
 0x311   : > { %3710 = vmatprep.subr.bf16.mxu1 %v4124_v7 }
 0x314   : > { %3711 = vmatpush3.bf16.msra.mxu1 %v4124_v7 }
 0x38e   : > { %v4568_v26 = vpop.f32.mrf.mxu1 }
 0x38f   : > { %5181 = vst [vmem:[#allocation9_spill] sm:$0xff] %v4568_v26  ;;  %v3470_v26 = vadd.f32 %v3469_v57, %v3468_v49 }
 0x390   : > { %v4570_v3 = vpop.f32.mrf.mxu1 }
 0x391   : > { %5182 = vst [vmem:[#allocation10_spill] sm:$0xff] %v4570_v3 }
 0x392   : > { %v4572_v6 = vpop.f32.mrf.mxu1 }
 0x393   : > { %5183 = vst [vmem:[#allocation11_spill] sm:$0xff] %v4572_v6 }
 0x394   : > { %v4574_v5 = vpop.f32.mrf.mxu1 }
 0x395   : > { %5184 = vst [vmem:[#allocation12_spill] sm:$0xff] %v4574_v5  ;;  %v3489_v5 = vpop.f32.mrf.mxu0 }
 0x3bf   : > { %v4576_v43 = vpop.f32.mrf.mxu1 }
 0x3c0   : > { %5185 = vst [vmem:[#allocation13_spill] sm:$0xff] %v4576_v43  ;;  %v3473_v43 = vadd.f32 %v3472_v53, %v3471_v32 }
 0x3c1   : > { %v4578_v40 = vpop.f32.mrf.mxu1 }
 0x3c2   : > { %5186 = vst [vmem:[#allocation14_spill] sm:$0xff] %v4578_v40 }
 0x3c3   : > { %v4580_v28 = vpop.f32.mrf.mxu1 }
 0x3c4   : > { %5187 = vst [vmem:[#allocation15_spill] sm:$0xff] %v4580_v28 }
 0x3c5   : > { %v4582_v56 = vpop.f32.mrf.mxu1 }
 0x3c6   : > { %5188 = vst [vmem:[#allocation16_spill] sm:$0xff] %v4582_v56  ;;  %v3490_v56 = vpop.f32.mrf.mxu0 }
 0x3c7   : > { %v3698_v38 = vpop.f32.mrf.mxu1 }
 0x3c8   : > { %v1493_v3 = vadd.f32 %v3698_v38, %v3476_v55  ;;  %v3491_v55 = vadd.f32 %v3490_v56, %v3489_v5  ;;  %v3488_v56 = vadd.f32 %v3487_v37, %v3486_v60  ;;  %v3883_v5 = vld [vmem:[%s5163_s8 + $0x78] sm:$0xff]  }
 0x3c9   : > { %v1484_v50 = vpop.f32.mrf.mxu1  ;;  %3508 = vmatprep.subr.bf16.mxu1 %v3883_v5  ;;  %v3889_v5 = vld [vmem:[%s5163_s8 + $0x60] sm:$0xff]  }
 0x3ca   : > { %v1485_v6 = vadd.f32 %v3470_v26, %v1484_v50  ;;  %v1521_v10 = vsel %vm583_vm2, %v1493_v3, -inf }
 0x3cb   : > { %1522 = vmax.xlane.f32.xlu0 %v1521_v10  ;;  %v3699_v45 = vpop.f32.mrf.mxu1  ;;  %v3485_v10 = vadd.f32 %v3484_v41, %v3483_v31 }
 0x3cc   : > { %v1496_v8 = vadd.f32 %v3699_v45, %v3479_v44  ;;  %v1515_v28 = vsel %vm583_vm2, %v1485_v6, -inf }
 0x3cd   : > { %v1487_v40 = vpop.f32.mrf.mxu1 }
 0x3ce   : > { %v1488_v13 = vadd.f32 %v3473_v43, %v1487_v40  ;;  %v1524_v50 = vsel %vm583_vm2, %v1496_v8, -inf }
 0x3cf   : > { %v3702_v2 = vpop.f32.mrf.mxu1  ;;  %1516 = vmax.xlane.f32.xlu0 %v1515_v28 }
 0x3d0   : > { %v1518_v49 = vsel %vm583_vm2, %v1488_v13, -inf  ;;  %v4600_v36 = vadd.f32 %v3702_v2, %v3488_v56 }
 0x3d1   : > { %v1500_v38 = vpop.f32.mrf.mxu1  ;;  %1519 = vmax.xlane.f32.xlu1 %v1518_v49 }
 0x3d2   : > { %v4602_v0 = vadd.f32 %v3482_v29, %v1500_v38  ;;  %v1533_v26 = vsel %vm583_vm2, %v4600_v36, -inf  ;;  %v3886_v29 = vld [vmem:[%s5163_s8 + $0x30] sm:$0xff]  }
 0x3d3   : > { %v3703_v57 = vpop.f32.mrf.mxu1  ;;  %1525 = vmax.xlane.f32.xlu0 %v1524_v50 }
 0x3d4   : > { %v4588_v32 = vadd.f32 %v3703_v57, %v3491_v55  ;;  %v1527_v31 = vsel %vm583_vm2, %v4602_v0, -inf }
 0x3d5   : > { %v1503_v53 = vpop.f32.mrf.mxu1 }
 0x3d6   : > { %v4590_v44 = vadd.f32 %v3485_v10, %v1503_v53  ;;  %v1536_v45 = vsel %vm583_vm2, %v4588_v32, -inf }
 0x3d7   : > { %1537 = vmax.xlane.f32.xlu0 %v1536_v45 }
 0x3d8   : > { %v1530_v28 = vsel %vm583_vm2, %v4590_v44, -inf }
 0x3db   : > { %1531 = vmax.xlane.f32.xlu0 %v1530_v28 }
 0x3e2   : > { %2016 = vrot.lane.b32.xlu1 %v4219_v62, %s4045_s27 }
 0x3f1   : > { %2014 = vrot.lane.b32.xlu0 %v4225_v1, %s4045_s27 }
 0x406   : > { %1534 = vmax.xlane.f32.xlu1 %v1533_v26  ;;  %v3887_v26 = vld [vmem:[%s5163_s8 + $0x68] sm:$0xff]  }
 0x40a   : > { %1528 = vmax.xlane.f32.xlu1 %v1527_v31  ;;  %v3888_v31 = vld [vmem:[%s5163_s8 + $0x28] sm:$0xff]  }
 0x41b   : > { %2012 = vrot.lane.b32.xlu1 %v4239_v9, %s4045_s27 }
 0x41f   : > { %2010 = vrot.lane.b32.xlu1 %v4253_v16, %s4045_s27 }
 0x454   : > { %v1523_v37 = vpop.xlane.xlu0 %1522 }
 0x455   : > { %v1541_v60 = vsub.f32 %v1493_v3, %v1523_v37  ;;  %v3884_v3 = vld [vmem:[%s5163_s8 + $0x38] sm:$0xff]   ;;  %v3890_v37 = vld [vmem:[%s5163_s8 + $0x20] sm:$0xff]  }
 0x458   : > { %v1517_v17 = vpop.xlane.xlu0 %1516 }
 0x459   : > { %v1539_v41 = vsub.f32 %v1485_v6, %v1517_v17  ;;  %v3885_v6 = vld [vmem:[%s5163_s8 + $0x70] sm:$0xff]   ;;  %v3891_v17 = vld [vmem:[%s5163_s8 + $0x58] sm:$0xff]  }
 0x45a   : > { %v1520_v61 = vpop.xlane.xlu1 %1519 }
 0x45b   : > { %v1540_v43 = vsub.f32 %v1488_v13, %v1520_v61  ;;  %v3892_v61 = vld [vmem:[%s5163_s8 + $0x18] sm:$0xff]  }
 0x45c   : > { %v1526_v40 = vpop.xlane.xlu0 %1525 }
 0x45d   : > { %v1547_v2 = vpack.c.bf16 %v1540_v43, %v1539_v41  ;;  %v1542_v49 = vsub.f32 %v1496_v8, %v1526_v40  ;;  %v3893_v41 = vld [vmem:[%s5163_s8 + $0x50] sm:$0xff]   ;;  %v3895_v40 = vld [vmem:[%s5163_s8 + $0x48] sm:$0xff]  }
 0x45e   : > { %v2017_v38 = vpop.permute.xlu1 %2016  ;;  %v3894_v43 = vld [vmem:[%s5163_s8 + $0x10] sm:$0xff]  }
 0x45f   : > { %v1552_v55 = vmul.bf16 1069105081, %v1547_v2  ;;  %v1548_v50 = vpack.c.bf16 %v1542_v49, %v1541_v60  ;;  %v2036_v57 = vsel %vm369_vm0, %v2017_v38, 0  ;;  %3816 = vmatprep.subr.msk.bf16.mxu0 %vm369_vm0, %v2017_v38  ;;  %v3896_v60 = vld [vmem:[%s5163_s8 + $0x8] sm:$0xff]   ;;  %v3897_v2 = vld [vmem:[%s5163_s8 + $0x40] sm:$0xff]   ;;  %v3899_v38 = vld [vmem:[%s5163_s8 + $0x78] sm:$0xff]  }
 0x460   : > { %3721 = vmatpush3.bf16.xpose.msra.mxu0 %v2036_v57  ;;  %v1538_v10 = vpop.xlane.xlu0 %1537  ;;  %v3898_v49 = vld [vmem:[%s5163_s8] sm:$0xff]  }
 0x461   : > { %3947 = vpow.bf16 %v1552_v55  ;;  %v1555_v53 = vmul.bf16 1069105081, %v1548_v50  ;;  %v1546_v57 = vsub.f32 %v4588_v32, %v1538_v10  ;;  %v5189_v10 = vmul.bf16 %v4289_v22, %v4314_v33 }
 0x462   : > { %v5190_v22 = vmul.bf16 %v4284_v21, %v4314_v33  ;;  %v3904_v21 = vld [vmem:[%s5163_s8 + $0x28] sm:$0xff]   ;;  %v3905_v33 = vld [vmem:[%s5163_s8 + $0x60] sm:$0xff]  }
 0x463   : > { %3949 = vpow.bf16 %v1555_v53 }
 0x464   : > { %v1532_v45 = vpop.xlane.xlu0 %1531 }
 0x468   : > { %v2015_v28 = vpop.permute.xlu0 %2014 }
 0x469   : > { %v2033_v13 = vsel %vm369_vm0, %v2015_v28, 0  ;;  %3817 = vmatprep.subr.msk.bf16.mxu0 %vm369_vm0, %v2015_v28 }
 0x46a   : > { %3723 = vmatpush3.bf16.xpose.msra.mxu0 %v2033_v13  ;;  %v1544_v13 = vsub.f32 %v4590_v44, %v1532_v45  ;;  %v3900_v45 = vld [vmem:[%s5163_s8 + $0x38] sm:$0xff]  }
 0x46f   : > { %v4619_v8 = vpop.eup %3947 }
 0x470   : > { %3712 = vmatprep.mubr.msk.bf16.mxu1 %vm583_vm2, %v4619_v8 }
 0x471   : > { %v4629_v56 = vpop.eup %3949 }
 0x472   : > { %3713 = vmatmul.mubr.msk.bf16.vlgmr.msra.gmra.mxu1 %vm583_vm2, %v4629_v56 }
 0x473   : > { %3509 = vmatpush3.bf16.msra.mxu1 %v3884_v3 }
 0x474   : > { %3510 = vmatprep.subr.bf16.mxu1 %v3885_v6 }
 0x477   : > { %3511 = vmatpush3.bf16.msra.mxu1 %v3886_v29 }
 0x478   : > { %3512 = vmatprep.subr.bf16.mxu1 %v3887_v26 }
 0x47b   : > { %3513 = vmatpush3.bf16.msra.mxu1 %v3888_v31 }
 0x47c   : > { %3514 = vmatprep.subr.bf16.mxu1 %v3889_v5 }
 0x47f   : > { %3515 = vmatpush3.bf16.msra.mxu1 %v3890_v37  ;;  %v3901_v37 = vld [vmem:[%s5163_s8 + $0x70] sm:$0xff]  }
 0x480   : > { %3516 = vmatprep.subr.bf16.mxu1 %v3891_v17  ;;  %v5191_v17 = vmul.bf16 %v4321_v35, %v4362_v52  ;;  %v5192_v35 = vmul.bf16 %v4340_v42, %v4362_v52  ;;  %v3908_v42 = vld [vmem:[%s5163_s8 + $0x18] sm:$0xff]   ;;  %v3909_v52 = vld [vmem:[%s5163_s8 + $0x50] sm:$0xff]  }
 0x483   : > { %3517 = vmatpush3.bf16.msra.mxu1 %v3892_v61  ;;  %v3902_v61 = vld [vmem:[%s5163_s8 + $0x30] sm:$0xff]  }
 0x484   : > { %3518 = vmatprep.subr.bf16.mxu1 %v3893_v41  ;;  %v3903_v41 = vld [vmem:[%s5163_s8 + $0x68] sm:$0xff]  }
 0x487   : > { %3519 = vmatpush3.bf16.msra.mxu1 %v3894_v43  ;;  %v5193_v43 = vmul.bf16 %v4377_v58, %v4412_v18  ;;  %v2333_v58 = vsel %vm369_vm0, %v4279_v20, %v4293_v24  ;;  %v3911_v24 = vld [vmem:[%s5163_s8 + $0x48] sm:$0xff]  }
 0x488   : > { %3520 = vmatprep.subr.bf16.mxu1 %v3895_v40  ;;  %v3906_v40 = vld [vmem:[%s5163_s8 + $0x20] sm:$0xff]  }
 0x48b   : > { %3521 = vmatpush3.bf16.msra.mxu1 %v3896_v60  ;;  %v3907_v60 = vld [vmem:[%s5163_s8 + $0x58] sm:$0xff]  }
 0x48c   : > { %3522 = vmatprep.subr.bf16.mxu1 %v3897_v2  ;;  %v5194_v2 = vmul.bf16 %v4405_v14, %v4412_v18  ;;  %v3915_v14 = vld [vmem:[%s5162_s7 + $0x4] ss:$8 sps:$4 sm:$0xff]  }
 0x48f   : > { %v1535_v55 = vpop.xlane.xlu1 %1534  ;;  %3523 = vmatpush3.bf16.msra.mxu1 %v3898_v49  ;;  %v5195_v49 = vmul.bf16 %v4422_v27, %v4452_v46  ;;  %v3912_v27 = vld [vmem:[%s5163_s8 + $0x8] sm:$0xff]  }
 0x490   : > { %v1545_v50 = vsub.f32 %v4600_v36, %v1535_v55  ;;  %3564 = vmatprep.subr.bf16.mxu1 %v3899_v38  ;;  %v3910_v38 = vld [vmem:[%s5163_s8 + $0x10] sm:$0xff]   ;;  %v2337_v55 = vsel %vm583_vm2, %v2333_v58, %v4277_v19  ;;  %v3916_v19 = vld [vmem:[%s5163_s8 + $0x40] sm:$0xff]  }
 0x491   : > { %v2341_v18 = vsel %vm592_vm1, %v2337_v55, %v4205_v47  ;;  %v3917_v47 = vld [vmem:[%s5163_s8] sm:$0xff]  }
 0x492   : > { %v1550_v53 = vpack.c.bf16 %v1546_v57, %v1545_v50  ;;  %v2334_v50 = vsel %vm369_vm0, %v4291_v23, %v4330_v39  ;;  %v2398_v57 = vmul.bf16 %v3915_v14, %v2341_v18 }
 0x493   : > { %v1529_v28 = vpop.xlane.xlu1 %1528 }
 0x494   : > { %v1543_v3 = vsub.f32 %v4602_v0, %v1529_v28  ;;  %v1561_v29 = vmul.bf16 1069105081, %v1550_v53  ;;  %v5196_v53 = vmul.bf16 %v4431_v30, %v4452_v46  ;;  %v2338_v28 = vsel %vm583_vm2, %v2334_v50, %v4316_v34 }
 0x495   : > { %v2343_v30 = vsel %vm592_vm1, %v2338_v28, %v4213_v54  ;;  %v3920_v54 = vld [vmem:[%s5162_s7 + $0x10] ss:$8 sps:$4 sm:$0xff]  }
 0x496   : > { %v1549_v6 = vpack.c.bf16 %v1544_v13, %v1543_v3  ;;  %v3913_v13 = vld [vmem:[%s5162_s7] ss:$8 sps:$4 sm:$0xff]   ;;  %v2335_v3 = vsel %vm369_vm0, %v4358_v51, %v4352_v48 }
 0x497   : > { %v2013_v26 = vpop.permute.xlu1 %2012  ;;  %v2397_v46 = vmul.bf16 %v3913_v13, %v2341_v18 }
 0x498   : > { %v1558_v31 = vmul.bf16 1069105081, %v1549_v6  ;;  %v2030_v5 = vsel %vm369_vm0, %v2013_v26, 0  ;;  %3818 = vmatprep.subr.msk.bf16.mxu0 %vm369_vm0, %v2013_v26  ;;  %v2339_v6 = vsel %vm583_vm2, %v2335_v3, %v4385_v63  ;;  %v2399_v26 = vmul.bf16 %v3920_v54, %v2343_v30 }
 0x499   : > { %3725 = vmatpush3.bf16.xpose.msra.mxu0 %v2030_v5 }
 0x49a   : > { %3951 = vpow.bf16 %v1558_v31  ;;  %v5197_v31 = vld [vmem:[#allocation4_spill] sm:$0xff] }
 0x49b   : > { %3953 = vpow.bf16 %v1561_v29  ;;  %v2011_v36 = vpop.permute.xlu1 %2010  ;;  %v2345_v29 = vsel %vm592_vm1, %v2339_v6, %v4227_v4  ;;  %v3923_v4 = vld [vmem:[%s5162_s7 + $0x20] ss:$8 sps:$4 sm:$0xff]  }
 0x49c   : > { %3819 = vmatprep.subr.msk.bf16.mxu0 %vm369_vm0, %v2011_v36  ;;  %v2027_v32 = vsel %vm369_vm0, %v2011_v36, 0 }
 0x4a1   : > { %3727 = vmatpush3.bf16.xpose.msra.mxu0 %v2027_v32  ;;  %v2401_v32 = vmul.bf16 %v3923_v4, %v2345_v29 }
 0x4a2   : > { %3736 = vmatprep.subr.bf16.mxu0 %v4142_v15 }
 0x4a8   : > { %v4684_v44 = vpop.eup %3951  ;;  %3729 = vmatmul.mubr.msk.bf16.vlgmr.msra.gmra.mxu0 %vm369_vm0, %v4330_v39  ;;  %v3918_v39 = vld [vmem:[%s5162_s7 + $0x14] ss:$8 sps:$4 sm:$0xff]  }
 0x4a9   : > { %v4688_v0 = vpop.eup %3953  ;;  %3716 = vmatprep.mubr.msk.bf16.mxu1 %vm583_vm2, %v4684_v44  ;;  %3732 = vmatprep.mubr.msk.bf16.mxu0 %vm369_vm0, %v4352_v48  ;;  %v2400_v34 = vmul.bf16 %v3918_v39, %v2343_v30  ;;  %v3921_v48 = vld [vmem:[%s5162_s7 + $0x24] ss:$8 sps:$4 sm:$0xff]  }
 0x4aa   : > { %3717 = vmatmul.mubr.msk.bf16.gmra.mxu1 %vm583_vm2, %v4688_v0  ;;  %3737 = vmatpush3.bf16.msra.mxu0 %v4142_v15  ;;  %v2402_v63 = vmul.bf16 %v3921_v48, %v2345_v29 }
 0x4ab   : > { %1977 = vmatprep.mubr.bf16.mxu1 %v5189_v10  ;;  %3738 = vmatprep.subr.bf16.mxu0 %v4128_v12 }
 0x4ae   : > { %3739 = vmatpush3.bf16.msra.mxu0 %v4128_v12 }
 0x4af   : > { %3740 = vmatprep.subr.bf16.mxu0 %v4126_v11 }
 0x4b0   : > { %3733 = vmatmul.mubr.msk.bf16.gmra.mxu0 %vm369_vm0, %v4414_v25 }
 0x4b2   : > { %1978 = vmatmul.mubr.bf16.vlgmr.msra.gmra.mxu1 %v5190_v22  ;;  %3741 = vmatpush3.bf16.msra.mxu0 %v4126_v11 }
 0x4b3   : > { %1985 = vmatprep.mubr.bf16.mxu1 %v5191_v17  ;;  %3565 = vmatpush3.bf16.msra.mxu1 %v3900_v45 }
 0x4b4   : > { %3566 = vmatprep.subr.bf16.mxu1 %v3901_v37  ;;  %3742 = vmatprep.subr.bf16.mxu0 %v4124_v7 }
 0x4b6   : > { %3743 = vmatpush3.bf16.msra.mxu0 %v4124_v7 }
 0x4b7   : > { %3567 = vmatpush3.bf16.msra.mxu1 %v3902_v61 }
 0x4b8   : > { %3568 = vmatprep.subr.bf16.mxu1 %v3903_v41 }
 0x4ba   : > { %1986 = vmatmul.mubr.bf16.gmra.mxu1 %v5192_v35 }
 0x4bb   : > { %1993 = vmatprep.mubr.bf16.mxu1 %v5193_v43  ;;  %3569 = vmatpush3.bf16.msra.mxu1 %v3904_v21 }
 0x4bc   : > { %3570 = vmatprep.subr.bf16.mxu1 %v3905_v33 }
 0x4bf   : > { %3571 = vmatpush3.bf16.msra.mxu1 %v3906_v40 }
 0x4c0   : > { %3572 = vmatprep.subr.bf16.mxu1 %v3907_v60 }
 0x4c2   : > { %1994 = vmatmul.mubr.bf16.gmra.mxu1 %v5194_v2 }
 0x4c3   : > { %2001 = vmatprep.mubr.bf16.mxu1 %v5195_v49  ;;  %3573 = vmatpush3.bf16.msra.mxu1 %v3908_v42 }
 0x4c4   : > { %3574 = vmatprep.subr.bf16.mxu1 %v3909_v52 }
 0x4c7   : > { %3575 = vmatpush3.bf16.msra.mxu1 %v3910_v38 }
 0x4c8   : > { %3576 = vmatprep.subr.bf16.mxu1 %v3911_v24 }
 0x4ca   : > { %2002 = vmatmul.mubr.bf16.gmra.mxu1 %v5196_v53 }
 0x4cb   : > { %3577 = vmatpush3.bf16.msra.mxu1 %v3912_v27  ;;  %2565 = vmatprep.mubr.bf16.mxu1 %v2398_v57 }
 0x4cc   : > { %3578 = vmatprep.subr.bf16.mxu1 %v3916_v19 }
 0x4cf   : > { %3579 = vmatpush3.bf16.msra.mxu1 %v3917_v47 }
 0x4d0   : > { %3768 = vmatprep.subr.bf16.mxu1 %v4142_v15 }
 0x4d2   : > { %2566 = vmatmul.mubr.bf16.vlgmr.msra.gmra.mxu1 %v2397_v46 }
 0x4d3   : > { %2573 = vmatprep.mubr.bf16.mxu1 %v2400_v34  ;;  %3769 = vmatpush3.bf16.msra.mxu1 %v4142_v15  ;;  %v2336_v15 = vsel %vm369_vm0, %v4379_v59, %v4414_v25  ;;  %v5198_v25 = vld [vmem:[#allocation3_spill] sm:$0xff] }
 0x4d4   : > { %3770 = vmatprep.subr.bf16.mxu1 %v4128_v12  ;;  %v2340_v5 = vsel %vm583_vm2, %v2336_v15, %v5197_v31 }
 0x4d5   : > { %v2347_v36 = vsel %vm592_vm1, %v2340_v5, %v5198_v25 }
 0x4d7   : > { %3771 = vmatpush3.bf16.msra.mxu1 %v4128_v12  ;;  %v3924_v12 = vld [vmem:[%s5162_s7 + $0x34] ss:$8 sps:$4 sm:$0xff]  }
 0x4d8   : > { %3772 = vmatprep.subr.bf16.mxu1 %v4126_v11  ;;  %v2404_v10 = vmul.bf16 %v3924_v12, %v2347_v36 }
 0x4da   : > { %2574 = vmatmul.mubr.bf16.gmra.mxu1 %v2399_v26 }
 0x4db   : > { %2581 = vmatprep.mubr.bf16.mxu1 %v2402_v63  ;;  %3773 = vmatpush3.bf16.msra.mxu1 %v4126_v11  ;;  %v3926_v11 = vld [vmem:[%s5162_s7 + $0x30] ss:$8 sps:$4 sm:$0xff]  }
 0x4dc   : > { %3774 = vmatprep.subr.bf16.mxu1 %v4124_v7  ;;  %v2403_v45 = vmul.bf16 %v3926_v11, %v2347_v36 }
 0x4df   : > { %3775 = vmatpush3.bf16.msra.mxu1 %v4124_v7 }
 0x4e2   : > { %2582 = vmatmul.mubr.bf16.gmra.mxu1 %v2401_v32 }
 0x4e3   : > { %2589 = vmatprep.mubr.bf16.mxu1 %v2404_v10 }
 0x4ea   : > { %2590 = vmatmul.mubr.bf16.gmra.mxu1 %v2403_v45 }
 0x532   : > { %v4834_v37 = vpop.f32.mrf.mxu1 }
 0x534   : > { %v4836_v22 = vpop.f32.mrf.mxu1 }
 0x536   : > { %v4838_v17 = vpop.f32.mrf.mxu1 }
 0x538   : > { %v4840_v61 = vpop.f32.mrf.mxu1 }
 0x568   : > { %v3730_v21 = vpop.f32.mrf.mxu0 }
 0x56a   : > { %v4842_v41 = vpop.f32.mrf.mxu1  ;;  %v2072_v43 = vpop.f32.mrf.mxu0 }
 0x56c   : > { %v4844_v7 = vpop.f32.mrf.mxu1  ;;  %v3731_v52 = vpop.f32.mrf.mxu0 }
 0x56e   : > { %v4846_v33 = vpop.f32.mrf.mxu1  ;;  %v2075_v24 = vpop.f32.mrf.mxu0 }
 0x570   : > { %v4848_v35 = vpop.f32.mrf.mxu1  ;;  %v3734_v57 = vpop.f32.mrf.mxu0 }
 0x572   : > { %v3524_v40 = vpop.f32.mrf.mxu1  ;;  %v2088_v30 = vpop.f32.mrf.mxu0 }
 0x574   : > { %v3525_v60 = vpop.f32.mrf.mxu1  ;;  %v3735_v54 = vpop.f32.mrf.mxu0 }
 0x575   : > { %v3526_v42 = vadd.f32 %v3525_v60, %v3524_v40 }
 0x576   : > { %v3527_v58 = vpop.f32.mrf.mxu1  ;;  %v2091_v15 = vpop.f32.mrf.mxu0 }
 0x577   : > { %v2073_v2 = vadd.f32 %v3526_v42, %v2072_v43 }
 0x578   : > { %v3528_v49 = vpop.f32.mrf.mxu1 }
 0x579   : > { %v3529_v38 = vadd.f32 %v3528_v49, %v3527_v58  ;;  %v2103_v55 = vsel %vm583_vm2, %v2073_v2, -inf }
 0x57a   : > { %v3530_v14 = vpop.f32.mrf.mxu1  ;;  %2104 = vmax.xlane.f32.xlu0 %v2103_v55 }
 0x57b   : > { %v2076_v18 = vadd.f32 %v3529_v38, %v2075_v24 }
 0x57c   : > { %v3531_v27 = vpop.f32.mrf.mxu1 }
 0x57d   : > { %v3532_v19 = vadd.f32 %v3531_v27, %v3530_v14  ;;  %v2106_v50 = vsel %vm583_vm2, %v2076_v18, -inf }
 0x57e   : > { %v3533_v53 = vpop.f32.mrf.mxu1  ;;  %2107 = vmax.xlane.f32.xlu1 %v2106_v50 }
 0x57f   : > { %v2081_v47 = vadd.f32 %v3730_v21, %v3532_v19 }
 0x580   : > { %v3534_v28 = vpop.f32.mrf.mxu1 }
 0x581   : > { %v3535_v13 = vadd.f32 %v3534_v28, %v3533_v53  ;;  %v2109_v39 = vsel %vm583_vm2, %v2081_v47, -inf }
 0x582   : > { %v3536_v46 = vpop.f32.mrf.mxu1  ;;  %2110 = vmax.xlane.f32.xlu0 %v2109_v39 }
 0x583   : > { %v2084_v3 = vadd.f32 %v3731_v52, %v3535_v13 }
 0x584   : > { %v3537_v34 = vpop.f32.mrf.mxu1 }
 0x585   : > { %v2112_v6 = vsel %vm583_vm2, %v2084_v3, -inf  ;;  %v3538_v11 = vadd.f32 %v3537_v34, %v3536_v46 }
 0x586   : > { %v3539_v48 = vpop.f32.mrf.mxu1  ;;  %2113 = vmax.xlane.f32.xlu0 %v2112_v6 }
 0x587   : > { %v2089_v21 = vadd.f32 %v3538_v11, %v2088_v30 }
 0x588   : > { %v3540_v29 = vpop.f32.mrf.mxu1 }
 0x589   : > { %v3541_v26 = vadd.f32 %v3540_v29, %v3539_v48  ;;  %v2115_v43 = vsel %vm583_vm2, %v2089_v21, -inf }
 0x58a   : > { %v3542_v63 = vpop.f32.mrf.mxu1 }
 0x58b   : > { %v2092_v31 = vadd.f32 %v3541_v26, %v2091_v15 }
 0x58c   : > { %v3543_v5 = vpop.f32.mrf.mxu1 }
 0x58d   : > { %v2118_v4 = vsel %vm583_vm2, %v2092_v31, -inf  ;;  %v3544_v45 = vadd.f32 %v3543_v5, %v3542_v63 }
 0x58e   : > { %v3545_v12 = vpop.f32.mrf.mxu1  ;;  %2119 = vmax.xlane.f32.xlu0 %v2118_v4 }
 0x58f   : > { %2604 = vrot.lane.b32.xlu1 %v4219_v62, %s4044_s26  ;;  %v2097_v40 = vadd.f32 %v3734_v57, %v3544_v45 }
 0x590   : > { %v3546_v25 = vpop.f32.mrf.mxu1 }
 0x591   : > { %v3547_v36 = vadd.f32 %v3546_v25, %v3545_v12  ;;  %v2121_v60 = vsel %vm583_vm2, %v2097_v40, -inf }
 0x592   : > { %v3580_v4 = vpop.f32.mrf.mxu1 }
 0x593   : > { %v2100_v32 = vadd.f32 %v3735_v54, %v3547_v36 }
 0x594   : > { %v3581_v12 = vpop.f32.mrf.mxu1 }
 0x595   : > { %v2124_v10 = vsel %vm583_vm2, %v2100_v32, -inf }
 0x596   : > { %2125 = vmax.xlane.f32.xlu0 %v2124_v10  ;;  %v3583_v25 = vpop.f32.mrf.mxu1 }
 0x598   : > { %v3584_v36 = vpop.f32.mrf.mxu1 }
 0x5ac   : > { %2602 = vrot.lane.b32.xlu0 %v4225_v1, %s4044_s26 }
 0x5b3   : > { %2116 = vmax.xlane.f32.xlu1 %v2115_v43 }
 0x5b7   : > { %2122 = vmax.xlane.f32.xlu1 %v2121_v60 }
 0x5c8   : > { %2600 = vrot.lane.b32.xlu1 %v4239_v9, %s4044_s26 }
 0x5cc   : > { %2598 = vrot.lane.b32.xlu1 %v4253_v16, %s4044_s26 }
 0x603   : > { %v2105_v62 = vpop.xlane.xlu0 %2104 }
 0x604   : > { %v2127_v52 = vsub.f32 %v2073_v2, %v2105_v62 }
 0x607   : > { %v2108_v42 = vpop.xlane.xlu1 %2107 }
 0x608   : > { %v2128_v58 = vsub.f32 %v2076_v18, %v2108_v42 }
 0x60a   : > { %v2135_v1 = vpack.c.bf16 %v2128_v58, %v2127_v52 }
 0x60b   : > { %v2605_v49 = vpop.permute.xlu1 %2604  ;;  %v2111_v38 = vpop.xlane.xlu0 %2110 }
 0x60c   : > { %v2140_v55 = vmul.bf16 1069105081, %v2135_v1  ;;  %3820 = vmatprep.subr.msk.bf16.mxu0 %vm369_vm0, %v2605_v49  ;;  %v2129_v14 = vsub.f32 %v2081_v47, %v2111_v38  ;;  %v2624_v57 = vsel %vm369_vm0, %v2605_v49, 0  ;;  %v3582_v38 = vadd.f32 %v3581_v12, %v3580_v4 }
 0x60e   : > { %3955 = vpow.bf16 %v2140_v55 }
 0x60f   : > { %v2114_v24 = vpop.xlane.xlu0 %2113 }
 0x610   : > { %v2130_v27 = vsub.f32 %v2084_v3, %v2114_v24 }
 0x612   : > { %v2136_v19 = vpack.c.bf16 %v2130_v27, %v2129_v14 }
 0x614   : > { %v2143_v50 = vmul.bf16 1069105081, %v2136_v19 }
 0x616   : > { %3957 = vpow.bf16 %v2143_v50  ;;  %v3585_v50 = vadd.f32 %v3584_v36, %v3583_v25 }
 0x617   : > { %v2120_v16 = vpop.xlane.xlu0 %2119 }
 0x618   : > { %v2132_v13 = vsub.f32 %v2092_v31, %v2120_v16 }
 0x61c   : > { %v4867_v9 = vpop.eup %3955 }
 0x61d   : > { %3744 = vmatprep.mubr.msk.bf16.mxu0 %vm583_vm2, %v4867_v9 }
 0x61f   : > { %v2126_v2 = vpop.xlane.xlu0 %2125 }
 0x620   : > { %v2134_v3 = vsub.f32 %v2100_v32, %v2126_v2  ;;  %v3586_v32 = vpop.f32.mrf.mxu1 }
 0x622   : > { %v3587_v10 = vpop.f32.mrf.mxu1 }
 0x623   : > { %v2603_v53 = vpop.permute.xlu0 %2602  ;;  %v3588_v24 = vadd.f32 %v3587_v10, %v3586_v32 }
 0x624   : > { %v4871_v18 = vpop.eup %3957  ;;  %v2621_v47 = vsel %vm369_vm0, %v2603_v53, 0  ;;  %v3589_v11 = vpop.f32.mrf.mxu1 }
 0x625   : > { %3745 = vmatmul.mubr.msk.bf16.vlgmr.msra.gmra.mxu0 %vm583_vm2, %v4871_v18 }
 0x626   : > { %3753 = vmatpush3.bf16.xpose.msra.mxu0 %v2624_v57 }
 0x627   : > { %3821 = vmatprep.subr.msk.bf16.mxu0 %vm369_vm0, %v2603_v53 }
 0x62e   : > { %3755 = vmatpush3.bf16.xpose.msra.mxu0 %v2621_v47 }
 0x63c   : > { %v2117_v28 = vpop.xlane.xlu1 %2116 }
 0x63d   : > { %v2131_v39 = vsub.f32 %v2089_v21, %v2117_v28  ;;  %v3590_v21 = vpop.f32.mrf.mxu1 }
 0x63e   : > { %v3591_v53 = vadd.f32 %v3590_v21, %v3589_v11  ;;  %v1563_v21 = vunpack.c.l.bf16 %v4619_v8 }
 0x63f   : > { %v2137_v30 = vpack.c.bf16 %v2132_v13, %v2131_v39  ;;  %v3592_v43 = vpop.f32.mrf.mxu1 }
 0x640   : > { %v2123_v46 = vpop.xlane.xlu1 %2122 }
 0x641   : > { %v2146_v34 = vmul.bf16 1069105081, %v2137_v30  ;;  %v2133_v6 = vsub.f32 %v2097_v40, %v2123_v46  ;;  %v3593_v40 = vpop.f32.mrf.mxu1 }
 0x642   : > { %v3594_v39 = vadd.f32 %v3593_v40, %v3592_v43  ;;  %v1571_v43 = vsel %vm583_vm2, %v1563_v21, 0.0 }
 0x643   : > { %3959 = vpow.bf16 %v2146_v34  ;;  %v2138_v54 = vpack.c.bf16 %v2134_v3, %v2133_v6  ;;  %v3595_v60 = vpop.f32.mrf.mxu1 }
 0x644   : > { %v2601_v48 = vpop.permute.xlu1 %2600 }
 0x645   : > { %v2149_v29 = vmul.bf16 1069105081, %v2138_v54  ;;  %v2618_v26 = vsel %vm369_vm0, %v2601_v48, 0  ;;  %3822 = vmatprep.subr.msk.bf16.mxu0 %vm369_vm0, %v2601_v48  ;;  %v3596_v42 = vpop.f32.mrf.mxu1 }
 0x646   : > { %3757 = vmatpush3.bf16.xpose.msra.mxu0 %v2618_v26  ;;  %v3597_v26 = vadd.f32 %v3596_v42, %v3595_v60  ;;  %v1565_v60 = vunpack.c.l.bf16 %v4629_v56  ;;  %v1564_v42 = vunpack.c.h.bf16 %v4619_v8  ;;  %v2152_v8 = vunpack.c.h.bf16 %v4867_v9 }
 0x647   : > { %3961 = vpow.bf16 %v2149_v29  ;;  %v3598_v1 = vpop.f32.mrf.mxu1 }
 0x648   : > { %v2599_v15 = vpop.permute.xlu1 %2598 }
 0x649   : > { %3823 = vmatprep.subr.msk.bf16.mxu0 %vm369_vm0, %v2599_v15  ;;  %v2615_v63 = vsel %vm369_vm0, %v2599_v15, 0  ;;  %v3599_v27 = vpop.f32.mrf.mxu1 }
 0x64a   : > { %v3600_v6 = vadd.f32 %v3599_v27, %v3598_v1  ;;  %v1577_v1 = vsel %vm583_vm2, %v1565_v60, 0.0 }
 0x64b   : > { %v3601_v28 = vpop.f32.mrf.mxu1 }
 0x64d   : > { %v3602_v48 = vpop.f32.mrf.mxu1 }
 0x64e   : > { %3759 = vmatpush3.bf16.xpose.msra.mxu0 %v2615_v63  ;;  %v3603_v25 = vadd.f32 %v3602_v48, %v3601_v28 }
 0x651   : > { %v4882_v31 = vpop.eup %3959 }
 0x652   : > { %3748 = vmatprep.mubr.msk.bf16.mxu0 %vm583_vm2, %v4882_v31 }
 0x655   : > { %v4886_v5 = vpop.eup %3961 }
 0x656   : > { %3749 = vmatmul.mubr.msk.bf16.gmra.mxu0 %vm583_vm2, %v4886_v5  ;;  %v2157_v48 = vunpack.c.l.bf16 %v4886_v5 }
 0x657   : > { %3760 = vmatprep.mubr.msk.bf16.mxu0 %vm369_vm0, %v4279_v20 }
 0x65e   : > { %3761 = vmatmul.mubr.msk.bf16.vlgmr.msra.gmra.mxu0 %vm369_vm0, %v4291_v23 }
 0x65f   : > { %3764 = vmatprep.mubr.msk.bf16.mxu0 %vm369_vm0, %v4358_v51 }
 0x666   : > { %3765 = vmatmul.mubr.msk.bf16.gmra.mxu0 %vm369_vm0, %v4379_v59 }
 0x6e5   : > { %v4898_v45 = vpop.f32.mrf.mxu0 }
 0x6e7   : > { %v4900_v20 = vpop.f32.mrf.mxu0 }
 0x6e9   : > { %v4902_v23 = vpop.f32.mrf.mxu0 }
 0x6eb   : > { %v4904_v51 = vpop.f32.mrf.mxu0 }
 0x716   : > { %v4906_v59 = vpop.f32.mrf.mxu0 }
 0x718   : > { %v4908_v62 = vpop.f32.mrf.mxu0 }
 0x71a   : > { %v4910_v52 = vpop.f32.mrf.mxu0 }
 0x71c   : > { %v4912_v58 = vpop.f32.mrf.mxu0 }
 0x71e   : > { %v3762_v49 = vpop.f32.mrf.mxu0 }
 0x71f   : > { %v4916_v16 = vadd.f32 %v3762_v49, %v3588_v24  ;;  %v1574_v49 = vsel %vm583_vm2, %v1564_v42, 0.0 }
 0x720   : > { %v2660_v55 = vpop.f32.mrf.mxu0 }
 0x721   : > { %v4914_v14 = vadd.f32 %v3582_v38, %v2660_v55  ;;  %v2697_v3 = vsel %vm583_vm2, %v4916_v16, -inf  ;;  %v2151_v38 = vunpack.c.l.bf16 %v4867_v9  ;;  %v1566_v55 = vunpack.c.h.bf16 %v4629_v56 }
 0x722   : > { %v3763_v19 = vpop.f32.mrf.mxu0  ;;  %v2154_v56 = vunpack.c.h.bf16 %v4871_v18  ;;  %v1568_v9 = vunpack.c.h.bf16 %v4684_v44 }
 0x723   : > { %v2691_v2 = vsel %vm583_vm2, %v4914_v14, -inf  ;;  %v4922_v30 = vadd.f32 %v3763_v19, %v3591_v53  ;;  %v2159_v24 = vsel %vm583_vm2, %v2151_v38, 0.0  ;;  %v1580_v27 = vsel %vm583_vm2, %v1566_v55, 0.0 }
 0x724   : > { %v2663_v57 = vpop.f32.mrf.mxu0  ;;  %2692 = vmax.xlane.f32.xlu0 %v2691_v2  ;;  %v2153_v19 = vunpack.c.l.bf16 %v4871_v18  ;;  %v2162_v2 = vsel %vm583_vm2, %v2152_v8, 0.0  ;;  %v2168_v28 = vsel %vm583_vm2, %v2154_v56, 0.0  ;;  %v1570_v18 = vunpack.c.h.bf16 %v4688_v0 }
 0x725   : > { %v4920_v47 = vadd.f32 %v3585_v50, %v2663_v57  ;;  %v2700_v4 = vsel %vm583_vm2, %v4922_v30, -inf  ;;  %v1567_v57 = vunpack.c.l.bf16 %v4684_v44  ;;  %v2156_v44 = vunpack.c.h.bf16 %v4882_v31 }
 0x726   : > { %v3766_v13 = vpop.f32.mrf.mxu0  ;;  %v2165_v50 = vsel %vm583_vm2, %v2153_v19, 0.0 }
 0x727   : > { %v2694_v46 = vsel %vm583_vm2, %v4920_v47, -inf  ;;  %v4930_v15 = vadd.f32 %v3766_v13, %v3600_v6  ;;  %v1583_v53 = vsel %vm583_vm2, %v1567_v57, 0.0  ;;  %v1569_v13 = vunpack.c.l.bf16 %v4688_v0 }
 0x728   : > { %v2676_v34 = vpop.f32.mrf.mxu0  ;;  %2695 = vmax.xlane.f32.xlu1 %v2694_v46  ;;  %2698 = vmax.xlane.f32.xlu0 %v2697_v3  ;;  %v1586_v46 = vsel %vm583_vm2, %v1568_v9, 0.0  ;;  %v2155_v3 = vunpack.c.l.bf16 %v4882_v31  ;;  %v1592_v6 = vsel %vm583_vm2, %v1570_v18, 0.0 }
 0x729   : > { %v4928_v54 = vadd.f32 %v3594_v39, %v2676_v34  ;;  %v2709_v10 = vsel %vm583_vm2, %v4930_v15, -inf  ;;  %v1589_v39 = vsel %vm583_vm2, %v1569_v13, 0.0  ;;  %v2158_v13 = vunpack.c.h.bf16 %v4886_v5  ;;  %v5199_v5 = vld [vmem:[#allocation5_spill] sm:$0xff] }
 0x72a   : > { %v3767_v29 = vpop.f32.mrf.mxu0  ;;  %v2171_v34 = vsel %vm583_vm2, %v2155_v3, 0.0 }
 0x72b   : > { %v2703_v63 = vsel %vm583_vm2, %v4928_v54, -inf  ;;  %v4938_v32 = vadd.f32 %v3767_v29, %v3603_v25  ;;  %v2177_v29 = vsel %vm583_vm2, %v2157_v48, 0.0 }
 0x72c   : > { %v2679_v12 = vpop.f32.mrf.mxu0  ;;  %2704 = vmax.xlane.f32.xlu1 %v2703_v63  ;;  %2701 = vmax.xlane.f32.xlu0 %v2700_v4 }
 0x72d   : > { %v4936_v36 = vadd.f32 %v3597_v26, %v2679_v12  ;;  %v2712_v40 = vsel %vm583_vm2, %v4938_v32, -inf  ;;  %v2174_v26 = vsel %vm583_vm2, %v2156_v44, 0.0 }
 0x72f   : > { %v2706_v11 = vsel %vm583_vm2, %v4936_v36, -inf }
 0x730   : > { %2710 = vmax.xlane.f32.xlu1 %v2709_v10  ;;  %2707 = vmax.xlane.f32.xlu0 %v2706_v11 }
 0x734   : > { %1572 = vadd.xlane.f32.xlu1 %v1571_v43  ;;  %2713 = vmax.xlane.f32.xlu0 %v2712_v40 }
 0x738   : > { %1578 = vadd.xlane.f32.xlu1 %v1577_v1  ;;  %1575 = vadd.xlane.f32.xlu0 %v1574_v49 }
 0x73c   : > { %2160 = vadd.xlane.f32.xlu1 %v2159_v24  ;;  %1581 = vadd.xlane.f32.xlu0 %v1580_v27 }
 0x740   : > { %2166 = vadd.xlane.f32.xlu1 %v2165_v50  ;;  %2163 = vadd.xlane.f32.xlu0 %v2162_v2 }
 0x744   : > { %1584 = vadd.xlane.f32.xlu1 %v1583_v53  ;;  %2169 = vadd.xlane.f32.xlu0 %v2168_v28 }
 0x748   : > { %1590 = vadd.xlane.f32.xlu1 %v1589_v39  ;;  %1587 = vadd.xlane.f32.xlu0 %v1586_v46  ;;  %v2180_v46 = vsel %vm583_vm2, %v2158_v13, 0.0 }
 0x74c   : > { %2172 = vadd.xlane.f32.xlu1 %v2171_v34  ;;  %1593 = vadd.xlane.f32.xlu0 %v1592_v6 }
 0x750   : > { %2178 = vadd.xlane.f32.xlu1 %v2177_v29  ;;  %2175 = vadd.xlane.f32.xlu0 %v2174_v26  ;;  %v987_v29 = vunpack.c.l.bf16 %v5199_v5 }
 0x7ad   : > { %v2693_v63 = vpop.xlane.xlu0 %2692 }
 0x7ae   : > { %v2715_v12 = vsub.f32 %v4914_v14, %v2693_v63 }
 0x7b1   : > { %v2696_v0 = vpop.xlane.xlu1 %2695  ;;  %v2699_v4 = vpop.xlane.xlu0 %2698 }
 0x7b2   : > { %v2716_v25 = vsub.f32 %v4920_v47, %v2696_v0  ;;  %v2717_v31 = vsub.f32 %v4916_v16, %v2699_v4  ;;  %v995_v4 = vsel %vm583_vm2, %v987_v29, 0.0 }
 0x7b4   : > { %v2723_v10 = vpack.c.bf16 %v2716_v25, %v2715_v12  ;;  %v988_v12 = vunpack.c.h.bf16 %v5199_v5  ;;  %v5200_v25 = vld [vmem:[#allocation6_spill] sm:$0xff] }
 0x7b5   : > { %v2705_v11 = vpop.xlane.xlu1 %2704  ;;  %v2702_v21 = vpop.xlane.xlu0 %2701 }
 0x7b6   : > { %v2728_v43 = vmul.bf16 1069105081, %v2723_v10  ;;  %v2718_v40 = vsub.f32 %v4922_v30, %v2702_v21  ;;  %v2719_v1 = vsub.f32 %v4928_v54, %v2705_v11  ;;  %v989_v10 = vunpack.c.l.bf16 %v5200_v25 }
 0x7b7   : > { %v990_v21 = vunpack.c.h.bf16 %v5200_v25 }
 0x7b8   : > { %3963 = vpow.bf16 %v2728_v43  ;;  %v2724_v60 = vpack.c.bf16 %v2718_v40, %v2717_v31  ;;  %v998_v31 = vsel %vm583_vm2, %v988_v12, 0.0  ;;  %v1001_v40 = vsel %vm583_vm2, %v989_v10, 0.0 }
 0x7b9   : > { %v2708_v42 = vpop.xlane.xlu0 %2707  ;;  %v2711_v55 = vpop.xlane.xlu1 %2710 }
 0x7ba   : > { %v2731_v49 = vmul.bf16 1069105081, %v2724_v60  ;;  %v2720_v38 = vsub.f32 %v4936_v36, %v2708_v42  ;;  %v2721_v24 = vsub.f32 %v4930_v15, %v2711_v55  ;;  %v5201_v60 = vld [vmem:[#allocation7_spill] sm:$0xff]  ;;  %v5202_v55 = vld [vmem:[#allocation8_spill] sm:$0xff] }
 0x7bb   : > { %v991_v42 = vunpack.c.l.bf16 %v5201_v60 }
 0x7bc   : > { %3965 = vpow.bf16 %v2731_v49  ;;  %v2725_v14 = vpack.c.bf16 %v2720_v38, %v2719_v1  ;;  %v1004_v1 = vsel %vm583_vm2, %v990_v21, 0.0  ;;  %v992_v38 = vunpack.c.h.bf16 %v5201_v60 }
 0x7bd   : > { %v2714_v47 = vpop.xlane.xlu0 %2713  ;;  %v1573_v63 = vpop.xlane.xlu1 %1572  ;;  %v1007_v49 = vsel %vm583_vm2, %v991_v42, 0.0 }
 0x7be   : > { %v2734_v27 = vmul.bf16 1069105081, %v2725_v14  ;;  %v2722_v19 = vsub.f32 %v4938_v32, %v2714_v47  ;;  %v993_v14 = vunpack.c.l.bf16 %v5202_v55 }
 0x7c0   : > { %3967 = vpow.bf16 %v2734_v27  ;;  %v2726_v16 = vpack.c.bf16 %v2722_v19, %v2721_v24  ;;  %v1010_v27 = vsel %vm583_vm2, %v992_v38, 0.0  ;;  %v1013_v19 = vsel %vm583_vm2, %v993_v14, 0.0  ;;  %v3930_v38 = vld [vmem:[%s5160_s5 + $0x20] sm:$0xff]  }
 0x7c1   : > { %v1576_v26 = vpop.xlane.xlu0 %1575  ;;  %v1579_v43 = vpop.xlane.xlu1 %1578 }
 0x7c2   : > { %v2737_v30 = vmul.bf16 1069105081, %v2726_v16  ;;  %v994_v16 = vunpack.c.h.bf16 %v5202_v55 }
 0x7c4   : > { %3969 = vpow.bf16 %v2737_v30 }
 0x7c5   : > { %v1582_v11 = vpop.xlane.xlu0 %1581  ;;  %3971 = vrcp.f32 %v1573_v63  ;;  %v2161_v24 = vpop.xlane.xlu1 %2160 }
 0x7c6   : > { %v3964_v8 = vpop.eup %3963  ;;  %3973 = vrcp.f32 %v1579_v43 }
 0x7c7   : > { %3776 = vmatprep.mubr.msk.bf16.mxu1 %vm583_vm2, %v3964_v8  ;;  %v2740_v15 = vunpack.c.h.bf16 %v3964_v8  ;;  %v2739_v56 = vunpack.c.l.bf16 %v3964_v8  ;;  %3975 = vrcp.f32 %v1582_v11 }
 0x7c8   : > { %3977 = vrcp.f32 %v1576_v26 }
 0x7c9   : > { %v2750_v32 = vsel %vm583_vm2, %v2740_v15, 0.0  ;;  %v2747_v28 = vsel %vm583_vm2, %v2739_v56, 0.0  ;;  %v2164_v47 = vpop.xlane.xlu0 %2163  ;;  %v2167_v8 = vpop.xlane.xlu1 %2166 }
 0x7ca   : > { %v3966_v54 = vpop.eup %3965  ;;  %3979 = vrcp.f32 %v2164_v47 }
 0x7cb   : > { %3777 = vmatmul.mubr.msk.bf16.vlgmr.msra.gmra.mxu1 %vm583_vm2, %v3966_v54  ;;  %v2742_v36 = vunpack.c.h.bf16 %v3966_v54  ;;  %v2741_v50 = vunpack.c.l.bf16 %v3966_v54  ;;  %v1016_v54 = vsel %vm583_vm2, %v994_v16, 0.0  ;;  %3981 = vrcp.f32 %v2161_v24 }
 0x7cd   : > { %v2756_v2 = vsel %vm583_vm2, %v2742_v36, 0.0  ;;  %v2753_v57 = vsel %vm583_vm2, %v2741_v50, 0.0  ;;  %v2170_v30 = vpop.xlane.xlu0 %2169 }
 0x7ce   : > { %v3968_v53 = vpop.eup %3967  ;;  %2757 = vadd.xlane.f32.xlu0 %v2756_v2  ;;  %2754 = vadd.xlane.f32.xlu1 %v2753_v57  ;;  %v1585_v2 = vpop.xlane.xlu1 %1584  ;;  %3983 = vrcp.f32 %v2170_v30 }
 0x7cf   : > { %3780 = vmatprep.mubr.msk.bf16.mxu1 %vm583_vm2, %v3968_v53  ;;  %v2744_v18 = vunpack.c.h.bf16 %v3968_v53  ;;  %v2743_v34 = vunpack.c.l.bf16 %v3968_v53  ;;  %3985 = vrcp.f32 %v2167_v8 }
 0x7d1   : > { %v2762_v6 = vsel %vm583_vm2, %v2744_v18, 0.0  ;;  %v2759_v48 = vsel %vm583_vm2, %v2743_v34, 0.0  ;;  %v1588_v50 = vpop.xlane.xlu0 %1587 }
 0x7d2   : > { %v3970_v9 = vpop.eup %3969  ;;  %2751 = vadd.xlane.f32.xlu0 %v2750_v32  ;;  %2748 = vadd.xlane.f32.xlu1 %v2747_v28  ;;  %v1591_v53 = vpop.xlane.xlu1 %1590  ;;  %3987 = vrcp.f32 %v1588_v50 }
 0x7d3   : > { %3781 = vmatmul.mubr.msk.bf16.gmra.mxu1 %vm583_vm2, %v3970_v9  ;;  %v2745_v39 = vunpack.c.l.bf16 %v3970_v9  ;;  %v2746_v44 = vunpack.c.h.bf16 %v3970_v9  ;;  %v3972_v36 = vpop.eup %3971  ;;  %3989 = vrcp.f32 %v1585_v2 }
 0x7d4   : > { %v1680_v57 = vmul.f32 %v3972_v36, %v4836_v22  ;;  %v3974_v15 = vpop.eup %3973 }
 0x7d5   : > { %v2765_v3 = vsel %vm583_vm2, %v2745_v39, 0.0  ;;  %v2768_v0 = vsel %vm583_vm2, %v2746_v44, 0.0  ;;  %v1594_v56 = vpop.xlane.xlu0 %1593  ;;  %v1682_v28 = vmul.f32 %v3974_v15, %v4834_v37  ;;  %v3976_v13 = vpop.eup %3975 }
 0x7d6   : > { %2181 = vadd.xlane.f32.xlu0 %v2180_v46  ;;  %2766 = vadd.xlane.f32.xlu1 %v2765_v3  ;;  %v3360_v32 = vpack.c.bf16 %v1680_v57, %v1680_v57  ;;  %v3978_v9 = vpop.eup %3977  ;;  %3991 = vrcp.f32 %v1594_v56  ;;  %v1683_v46 = vmul.f32 %v3976_v13, %v4838_v17 }
 0x7d7   : > { %v3362_v39 = vpack.c.bf16 %v1682_v28, %v1682_v28  ;;  %v3980_v3 = vpop.eup %3979  ;;  %3993 = vrcp.f32 %v1591_v53  ;;  %v1681_v18 = vmul.f32 %v3978_v9, %v4840_v61  ;;  %v5203_v28 = vld [vmem:[#allocation10_spill] sm:$0xff] }
 0x7d8   : > { %v3982_v34 = vpop.eup %3981  ;;  %v3363_v37 = vpack.c.bf16 %v1683_v46, %v1683_v46 }
 0x7d9   : > { %v2176_v22 = vpop.xlane.xlu0 %2175  ;;  %v3361_v5 = vpack.c.bf16 %v1681_v18, %v1681_v18  ;;  %v2268_v29 = vmul.f32 %v3982_v34, %v4900_v20  ;;  %v5204_v18 = vld [vmem:[#allocation9_spill] sm:$0xff] }
 0x7da   : > { %2763 = vadd.xlane.f32.xlu0 %v2762_v6  ;;  %2760 = vadd.xlane.f32.xlu1 %v2759_v48  ;;  %v2173_v6 = vpop.xlane.xlu1 %2172  ;;  %3995 = vrcp.f32 %v2176_v22  ;;  %v2269_v48 = vmul.f32 %v3980_v3, %v4904_v51 }
 0x7db   : > { %v3984_v44 = vpop.eup %3983  ;;  %3997 = vrcp.f32 %v2173_v6 }
 0x7dc   : > { %v3986_v26 = vpop.eup %3985  ;;  %v3369_v17 = vpack.c.bf16 %v2269_v48, %v2269_v48  ;;  %v2271_v61 = vmul.f32 %v3984_v44, %v4902_v23 }
 0x7de   : > { %2769 = vadd.xlane.f32.xlu0 %v2768_v0  ;;  %996 = vadd.xlane.f32.xlu1 %v995_v4  ;;  %v3368_v0 = vpack.c.bf16 %v2268_v29, %v2268_v29  ;;  %v2270_v4 = vmul.f32 %v3986_v26, %v4898_v45  ;;  %v3371_v51 = vpack.c.bf16 %v2271_v61, %v2271_v61  ;;  %v2179_v55 = vpop.xlane.xlu1 %2178  ;;  %v5206_v61 = vld [vmem:[#allocation14_spill] sm:$0xff] }
 0x7df   : > { %v3988_v63 = vpop.eup %3987 }
 0x7e0   : > { %v3990_v12 = vpop.eup %3989  ;;  %v1685_v20 = vmul.f32 %v3988_v63, %v4848_v35  ;;  %v3370_v10 = vpack.c.bf16 %v2270_v4, %v2270_v4  ;;  %v5207_v4 = vld [vmem:[#allocation11_spill] sm:$0xff] }
 0x7e1   : > { %v1684_v11 = vmul.f32 %v3990_v12, %v4844_v7 }
 0x7e2   : > { %999 = vadd.xlane.f32.xlu0 %v998_v31  ;;  %1002 = vadd.xlane.f32.xlu1 %v1001_v40  ;;  %v3365_v23 = vpack.c.bf16 %v1685_v20, %v1685_v20 }
 0x7e3   : > { %v3992_v25 = vpop.eup %3991  ;;  %v3364_v31 = vpack.c.bf16 %v1684_v11, %v1684_v11 }
 0x7e4   : > { %v3994_v21 = vpop.eup %3993  ;;  %v1687_v45 = vmul.f32 %v3992_v25, %v4846_v33 }
 0x7e5   : > { %v1686_v40 = vmul.f32 %v3994_v21, %v4842_v41  ;;  %v3927_v41 = vld [vmem:[%s5160_s5 + $0x38] sm:$0xff]   ;;  %v5208_v21 = vld [vmem:[#allocation13_spill] sm:$0xff] }
 0x7e6   : > { %1005 = vadd.xlane.f32.xlu0 %v1004_v1  ;;  %1008 = vadd.xlane.f32.xlu1 %v1007_v49  ;;  %v3367_v35 = vpack.c.bf16 %v1687_v45, %v1687_v45 }
 0x7e7   : > { %v3996_v43 = vpop.eup %3995  ;;  %v3366_v42 = vpack.c.bf16 %v1686_v40, %v1686_v40  ;;  %3784 = vmatprep.subr.bf16.mxu0 %v3927_v41 }
 0x7e8   : > { %v3998_v60 = vpop.eup %3997  ;;  %v2273_v7 = vmul.f32 %v3996_v43, %v4912_v58  ;;  %v3928_v58 = vld [vmem:[%s5160_s5 + $0x30] sm:$0xff]   ;;  %3785 = vmatpush3.bf16.msra.mxu0 %v3927_v41 }
 0x7e9   : > { %v2272_v1 = vmul.f32 %v3998_v60, %v4908_v62  ;;  %3786 = vmatprep.subr.bf16.mxu0 %v3928_v58  ;;  %v3929_v62 = vld [vmem:[%s5160_s5 + $0x28] sm:$0xff]   ;;  %v3931_v60 = vld [vmem:[%s5160_s5 + $0x18] sm:$0xff]  }
 0x7ea   : > { %1011 = vadd.xlane.f32.xlu0 %v1010_v27  ;;  %1014 = vadd.xlane.f32.xlu1 %v1013_v19  ;;  %v3373_v33 = vpack.c.bf16 %v2273_v7, %v2273_v7 }
 0x7eb   : > { %v3372_v49 = vpack.c.bf16 %v2272_v1, %v2272_v1  ;;  %v5210_v1 = vld [vmem:[#allocation15_spill] sm:$0xff] }
 0x7ec   : > { %3787 = vmatpush3.bf16.msra.mxu0 %v3928_v58  ;;  %v3932_v58 = vld [vmem:[%s5160_s5 + $0x10] sm:$0xff]  }
 0x7ed   : > { %3788 = vmatprep.subr.bf16.mxu0 %v3929_v62 }
 0x7ee   : > { %1017 = vadd.xlane.f32.xlu0 %v1016_v54 }
 0x7f0   : > { %3789 = vmatpush3.bf16.msra.mxu0 %v3929_v62 }
 0x7f1   : > { %3790 = vmatprep.subr.bf16.mxu0 %v3930_v38 }
 0x7f4   : > { %3791 = vmatpush3.bf16.msra.mxu0 %v3930_v38 }
 0x7f5   : > { %3792 = vmatprep.subr.bf16.mxu0 %v3931_v60 }
 0x7f8   : > { %3793 = vmatpush3.bf16.msra.mxu0 %v3931_v60 }
 0x7f9   : > { %3794 = vmatprep.subr.bf16.mxu0 %v3932_v58 }
 0x7fb   : > { %1712 = vrot.lane.b32.xlu1 %v3360_v32, %s4044_s26 }
 0x7fc   : > { %3795 = vmatpush3.bf16.msra.mxu0 %v3932_v58 }
 0x7ff   : > { %1716 = vrot.lane.b32.xlu1 %v3362_v39, %s4044_s26 }
 0x803   : > { %1718 = vrot.lane.b32.xlu1 %v3363_v37, %s4044_s26  ;;  %v5205_v37 = vld [vmem:[#allocation12_spill] sm:$0xff] }
 0x804   : > { %1714 = vrot.lane.b32.xlu0 %v3361_v5, %s4044_s26 }
 0x807   : > { %2302 = vrot.lane.b32.xlu1 %v3369_v17, %s4045_s27 }
 0x808   : > { %2300 = vrot.lane.b32.xlu0 %v3368_v0, %s4045_s27 }
 0x80b   : > { %2306 = vrot.lane.b32.xlu1 %v3371_v51, %s4045_s27 }
 0x80c   : > { %2304 = vrot.lane.b32.xlu0 %v3370_v10, %s4045_s27 }
 0x80f   : > { %1722 = vrot.lane.b32.xlu1 %v3365_v23, %s4044_s26 }
 0x810   : > { %1720 = vrot.lane.b32.xlu0 %v3364_v31, %s4044_s26  ;;  %v5209_v31 = vld [vmem:[#allocation16_spill] sm:$0xff] }
 0x813   : > { %1726 = vrot.lane.b32.xlu1 %v3367_v35, %s4044_s26 }
 0x814   : > { %1724 = vrot.lane.b32.xlu0 %v3366_v42, %s4044_s26 }
 0x817   : > { %2310 = vrot.lane.b32.xlu1 %v3373_v33, %s4045_s27 }
 0x818   : > { %2308 = vrot.lane.b32.xlu0 %v3372_v49, %s4045_s27 }
 0x857   : > { %v2755_v14 = vpop.xlane.xlu1 %2754  ;;  %v2758_v47 = vpop.xlane.xlu0 %2757 }
 0x85b   : > { %v2749_v24 = vpop.xlane.xlu1 %2748  ;;  %v5054_v27 = vpop.xlane.xlu0 %2751 }
 0x85f   : > { %v5056_v19 = vpop.xlane.xlu1 %2766  ;;  %v5058_v16 = vpop.xlane.xlu0 %2181 }
 0x863   : > { %v5060_v30 = vpop.xlane.xlu1 %2760  ;;  %v5062_v8 = vpop.xlane.xlu0 %2763 }
 0x867   : > { %v997_v54 = vpop.xlane.xlu1 %996  ;;  %v5064_v36 = vpop.xlane.xlu0 %2769 }
 0x868   : > { %3999 = vrcp.f32 %v997_v54 }
 0x86b   : > { %v1003_v50 = vpop.xlane.xlu1 %1002  ;;  %v1000_v2 = vpop.xlane.xlu0 %999 }
 0x86c   : > { %4001 = vrcp.f32 %v1003_v50 }
 0x86d   : > { %4003 = vrcp.f32 %v1000_v2 }
 0x86f   : > { %v1009_v57 = vpop.xlane.xlu1 %1008  ;;  %v1006_v15 = vpop.xlane.xlu0 %1005 }
 0x870   : > { %4005 = vrcp.f32 %v1009_v57 }
 0x871   : > { %4007 = vrcp.f32 %v1006_v15 }
 0x873   : > { %v1015_v56 = vpop.xlane.xlu1 %1014  ;;  %v1012_v53 = vpop.xlane.xlu0 %1011 }
 0x874   : > { %4009 = vrcp.f32 %v1015_v56 }
 0x875   : > { %v4000_v32 = vpop.eup %3999  ;;  %4011 = vrcp.f32 %v1012_v53 }
 0x876   : > { %v1104_v13 = vmul.f32 %v4000_v32, %v5203_v28 }
 0x877   : > { %v1713_v9 = vpop.permute.xlu1 %1712  ;;  %v1018_v39 = vpop.xlane.xlu0 %1017 }
 0x878   : > { %v3352_v46 = vpack.c.bf16 %v1104_v13, %v1104_v13  ;;  %4013 = vrcp.f32 %v1018_v39 }
 0x879   : > { %v4002_v3 = vpop.eup %4001  ;;  %4015 = vrcp.f32 %v2755_v14 }
 0x87a   : > { %v4004_v22 = vpop.eup %4003  ;;  %1145 = vst.msk [vmem:[#allocation2] sm:$0xf] %vm1144_vm3, %v3352_v46  ;;  %v1106_v34 = vmul.f32 %v4002_v3, %v5204_v18  ;;  %4017 = vrcp.f32 %v2749_v24 }
 0x87b   : > { %1737 = vst.msk [vmem:[#allocation2] sm:$0xf] %vm1736_vm4, %v1713_v9  ;;  %v1717_v6 = vpop.permute.xlu1 %1716  ;;  %v1105_v48 = vmul.f32 %v4004_v22, %v5205_v37  ;;  %v1715_v44 = vpop.permute.xlu0 %1714  ;;  %4019 = vrcp.f32 %v2179_v55 }
 0x87c   : > { %v3354_v5 = vpack.c.bf16 %v1106_v34, %v1106_v34  ;;  %4021 = vrcp.f32 %v2758_v47  ;;  %v3933_v47 = vld [vmem:[%s5160_s5 + $0x8] sm:$0xff]  }
 0x87d   : > { %v4006_v29 = vpop.eup %4005  ;;  %v3353_v26 = vpack.c.bf16 %v1105_v48, %v1105_v48  ;;  %4023 = vrcp.f32 %v5054_v27  ;;  %3796 = vmatprep.subr.bf16.mxu0 %v3933_v47 }
 0x87e   : > { %v4008_v17 = vpop.eup %4007  ;;  %1147 = vst.msk [vmem:[#allocation2 + $0x8] sm:$0xf] %vm1144_vm3, %v3354_v5  ;;  %v1108_v63 = vmul.f32 %v4006_v29, %v5206_v61  ;;  %4025 = vrcp.f32 %v5058_v16  ;;  %3797 = vmatpush3.bf16.msra.mxu0 %v3933_v47 }
 0x87f   : > { %1739 = vst.msk [vmem:[#allocation2 + $0x8] sm:$0xf] %vm1736_vm4, %v1717_v6  ;;  %v1719_v0 = vpop.permute.xlu1 %1718  ;;  %v1107_v12 = vmul.f32 %v4008_v17, %v5207_v4  ;;  %v2301_v51 = vpop.permute.xlu0 %2300  ;;  %4027 = vrcp.f32 %v5060_v30 }
 0x880   : > { %1146 = vst.msk [vmem:[#allocation2 + $0x4] sm:$0xf] %vm1144_vm3, %v3353_v26  ;;  %v3356_v20 = vpack.c.bf16 %v1108_v63, %v1108_v63  ;;  %4029 = vrcp.f32 %v5056_v19 }
 0x881   : > { %1738 = vst.msk [vmem:[#allocation2 + $0x4] sm:$0xf] %vm1736_vm4, %v1715_v44  ;;  %v4010_v25 = vpop.eup %4009  ;;  %v3355_v10 = vpack.c.bf16 %v1107_v12, %v1107_v12  ;;  %4031 = vrcp.f32 %v5062_v8  ;;  %v3934_v8 = vld [vmem:[%s5160_s5] sm:$0xff]  }
 0x882   : > { %2325 = vst.msk [vmem:[#allocation2] sm:$0xf] %vm2324_vm5, %v2301_v51  ;;  %v4012_v11 = vpop.eup %4011  ;;  %v1110_v23 = vmul.f32 %v4010_v25, %v5208_v21  ;;  %4033 = vrcp.f32 %v5064_v36  ;;  %3798 = vmatprep.subr.bf16.mxu0 %v3934_v8 }
 0x883   : > { %1149 = vst.msk [vmem:[#allocation2 + $0x10] sm:$0xf] %vm1144_vm3, %v3356_v20  ;;  %1148 = vst.msk [vmem:[#allocation2 + $0xc] sm:$0xf] %vm1144_vm3, %v3355_v10  ;;  %v2303_v45 = vpop.permute.xlu1 %2302  ;;  %v2305_v43 = vpop.permute.xlu0 %2304  ;;  %v1109_v40 = vmul.f32 %v4012_v11, %v5209_v31  ;;  %3799 = vmatpush3.bf16.msra.mxu0 %v3934_v8 }
 0x884   : > { %1740 = vst.msk [vmem:[#allocation2 + $0xc] sm:$0xf] %vm1736_vm4, %v1719_v0  ;;  %v3358_v35 = vpack.c.bf16 %v1110_v23, %v1110_v23 }
 0x885   : > { %2326 = vst.msk [vmem:[#allocation2 + $0x4] sm:$0xf] %vm2324_vm5, %v2303_v45  ;;  %2327 = vst.msk [vmem:[#allocation2 + $0x8] sm:$0xf] %vm2324_vm5, %v2305_v43  ;;  %v4014_v7 = vpop.eup %4013  ;;  %v3357_v42 = vpack.c.bf16 %v1109_v40, %v1109_v40 }
 0x886   : > { %1151 = vst.msk [vmem:[#allocation2 + $0x18] sm:$0xf] %vm1144_vm3, %v3358_v35  ;;  %v1111_v33 = vmul.f32 %v4014_v7, %v5210_v1  ;;  %v4016_v38 = vpop.eup %4015 }
 0x887   : > { %v2307_v49 = vpop.permute.xlu1 %2306  ;;  %v1721_v41 = vpop.permute.xlu0 %1720  ;;  %1150 = vst.msk [vmem:[#allocation2 + $0x14] sm:$0xf] %vm1144_vm3, %v3357_v42 }
 0x888   : > { %2328 = vst.msk [vmem:[#allocation2 + $0xc] sm:$0xf] %vm2324_vm5, %v2307_v49  ;;  %v3359_v62 = vpack.c.bf16 %v1111_v33, %v1111_v33  ;;  %v4018_v16 = vpop.eup %4017  ;;  %v3335_v33 = vld [vmem:[%s5161_s6] ss:$0 sm:$0xff] }
 0x889   : > { %1741 = vst.msk [vmem:[#allocation2 + $0x10] sm:$0xf] %vm1736_vm4, %v1721_v41  ;;  %v4020_v54 = vpop.eup %4019 }
 0x88a   : > { %1152 = vst.msk [vmem:[#allocation2 + $0x1c] sm:$0xf] %vm1144_vm3, %v3359_v62  ;;  %v4022_v2 = vpop.eup %4021  ;;  %v2274_v46 = vmul.f32 %v4020_v54, %v4906_v59 }
 0x88b   : > { %v3778_v55 = vpop.f32.mrf.mxu1  ;;  %v1723_v14 = vpop.permute.xlu1 %1722 }
 0x88c   : > { %v2858_v24 = vmul.f32 %v4016_v38, %v3778_v55  ;;  %1742 = vst.msk [vmem:[#allocation2 + $0x14] sm:$0xf] %vm1736_vm4, %v1723_v14  ;;  %v1725_v27 = vpop.permute.xlu0 %1724  ;;  %v4024_v32 = vpop.eup %4023  ;;  %v3374_v48 = vpack.c.bf16 %v2274_v46, %v2274_v46 }
 0x88d   : > { %1743 = vst.msk [vmem:[#allocation2 + $0x18] sm:$0xf] %vm1736_vm4, %v1725_v27  ;;  %v2825_v30 = vpop.f32.mrf.mxu1  ;;  %v4026_v3 = vpop.eup %4025 }
 0x88e   : > { %v3378_v50 = vpack.c.bf16 %v2858_v24, %v2858_v24  ;;  %v2856_v19 = vmul.f32 %v4018_v16, %v2825_v30  ;;  %v4028_v18 = vpop.eup %4027  ;;  %v2275_v44 = vmul.f32 %v4026_v3, %v4910_v52 }
 0x88f   : > { %v3779_v57 = vpop.f32.mrf.mxu1  ;;  %v1727_v15 = vpop.permute.xlu1 %1726 }
 0x890   : > { %v2859_v56 = vmul.f32 %v4022_v2, %v3779_v57  ;;  %1744 = vst.msk [vmem:[#allocation2 + $0x1c] sm:$0xf] %vm1736_vm4, %v1727_v15  ;;  %v2309_v53 = vpop.permute.xlu0 %2308  ;;  %2892 = vrot.lane.b32.xlu0 %v3378_v50, %s4043_s25  ;;  %v3376_v13 = vpack.c.bf16 %v2856_v19, %v2856_v19  ;;  %v4030_v29 = vpop.eup %4029  ;;  %v3375_v0 = vpack.c.bf16 %v2275_v44, %v2275_v44 }
 0x891   : > { %2329 = vst.msk [vmem:[#allocation2 + $0x10] sm:$0xf] %vm2324_vm5, %v2309_v53  ;;  %v2828_v28 = vpop.f32.mrf.mxu1  ;;  %v4032_v59 = vpop.eup %4031 }
 0x892   : > { %v3379_v9 = vpack.c.bf16 %v2859_v56, %v2859_v56  ;;  %v2857_v39 = vmul.f32 %v4024_v32, %v2828_v28  ;;  %v4034_v4 = vpop.eup %4033 }
 0x893   : > { %v3782_v22 = vpop.f32.mrf.mxu1  ;;  %v2311_v36 = vpop.permute.xlu1 %2310 }
 0x894   : > { %2330 = vst.msk [vmem:[#allocation2 + $0x14] sm:$0xf] %vm2324_vm5, %v2311_v36  ;;  %2888 = vrot.lane.b32.xlu0 %v3376_v13, %s4043_s25  ;;  %2894 = vrot.lane.b32.xlu1 %v3379_v9, %s4043_s25  ;;  %v3377_v6 = vpack.c.bf16 %v2857_v39, %v2857_v39  ;;  %v2862_v17 = vmul.f32 %v4030_v29, %v3782_v22 }
 0x895   : > { %v2841_v34 = vpop.f32.mrf.mxu1 }
 0x896   : > { %v2860_v37 = vmul.f32 %v4028_v18, %v2841_v34  ;;  %v3382_v12 = vpack.c.bf16 %v2862_v17, %v2862_v17 }
 0x897   : > { %v3783_v5 = vpop.f32.mrf.mxu1 }
 0x898   : > { %2312 = vrot.lane.b32.xlu0 %v3374_v48, %s4045_s27  ;;  %2890 = vrot.lane.b32.xlu1 %v3377_v6, %s4043_s25  ;;  %v3380_v61 = vpack.c.bf16 %v2860_v37, %v2860_v37  ;;  %v2863_v51 = vmul.f32 %v4034_v4, %v3783_v5 }
 0x899   : > { %v2844_v26 = vpop.f32.mrf.mxu1 }
 0x89a   : > { %v2861_v63 = vmul.f32 %v4032_v59, %v2844_v26  ;;  %v3383_v20 = vpack.c.bf16 %v2863_v51, %v2863_v51 }
 0x89c   : > { %2896 = vrot.lane.b32.xlu0 %v3380_v61, %s4043_s25  ;;  %2314 = vrot.lane.b32.xlu1 %v3375_v0, %s4045_s27  ;;  %v3381_v52 = vpack.c.bf16 %v2861_v63, %v2861_v63 }
 0x8a0   : > { %2900 = vrot.lane.b32.xlu0 %v3382_v12, %s4043_s25  ;;  %2898 = vrot.lane.b32.xlu1 %v3381_v52, %s4043_s25 }
 0x8a4   : > { %2902 = vrot.lane.b32.xlu1 %v3383_v20, %s4043_s25 }
 0x902   : > { %v2893_v25 = vpop.permute.xlu0 %2892 }
 0x903   : > { %2915 = vst.msk [vmem:[#allocation2 + $0x8] sm:$0xf] %vm2912_vm6, %v2893_v25 }
 0x906   : > { %v2895_v10 = vpop.permute.xlu1 %2894  ;;  %v2889_v11 = vpop.permute.xlu0 %2888 }
 0x907   : > { %2916 = vst.msk [vmem:[#allocation2 + $0xc] sm:$0xf] %vm2912_vm6, %v2895_v10  ;;  %2913 = vst.msk [vmem:[#allocation2] sm:$0xf] %vm2912_vm6, %v2889_v11 }
 0x90a   : > { %v2891_v21 = vpop.permute.xlu1 %2890  ;;  %v2313_v23 = vpop.permute.xlu0 %2312 }
 0x90b   : > { %2914 = vst.msk [vmem:[#allocation2 + $0x4] sm:$0xf] %vm2912_vm6, %v2891_v21 }
 0x90c   : > { %2331 = vst.msk [vmem:[#allocation2 + $0x18] sm:$0xf] %vm2324_vm5, %v2313_v23 }
 0x90e   : > { %v2315_v45 = vpop.permute.xlu1 %2314  ;;  %v2897_v43 = vpop.permute.xlu0 %2896  ;;  %v3936_v35 = vld [vmem:[#allocation2 + $0x8] sm:$0xff]  }
 0x90f   : > { %2332 = vst.msk [vmem:[#allocation2 + $0x1c] sm:$0xf] %vm2324_vm5, %v2315_v45 }
 0x910   : > { %2917 = vst.msk [vmem:[#allocation2 + $0x10] sm:$0xf] %vm2912_vm6, %v2897_v43 }
 0x912   : > { %v2899_v31 = vpop.permute.xlu1 %2898  ;;  %v2901_v40 = vpop.permute.xlu0 %2900  ;;  %v3935_v60 = vld [vmem:[#allocation2] sm:$0xff]  }
 0x913   : > { %2918 = vst.msk [vmem:[#allocation2 + $0x14] sm:$0xf] %vm2912_vm6, %v2899_v31  ;;  %2919 = vst.msk [vmem:[#allocation2 + $0x18] sm:$0xf] %vm2912_vm6, %v2901_v40  ;;  %3800 = vmatprep.mubr.bf16.mxu0 %v3935_v60 }
 0x914   : > { %3801 = vmatmul.mubr.bf16.vlgmr.msra.gmra.mxu0 %v3936_v35 }
 0x916   : > { %v2903_v7 = vpop.permute.xlu1 %2902 }
 0x917   : > { %2920 = vst.msk [vmem:[#allocation2 + $0x1c] sm:$0xf] %vm2912_vm6, %v2903_v7 }
 0x91a   : > { %v3937_v42 = vld [vmem:[#allocation2 + $0x10] sm:$0xff]  }
 0x91b   : > { %3804 = vmatprep.mubr.bf16.mxu0 %v3937_v42 }
 0x91e   : > { %v3938_v1 = vld [vmem:[#allocation2 + $0x18] sm:$0xff]  }
 0x91f   : > { %3805 = vmatmul.mubr.bf16.gmra.mxu0 %v3938_v1 }
 0x9d4   : > { %v3802_v49 = vpop.f32.mrf.mxu0 }
 0x9d5   : > { %v3067_v41 = vadd.f32 %v3802_v49, %v3335_v33 }
 0x9d6   : > { %v3058_v58 = vpop.f32.mrf.mxu0 }
 0x9d7   : > { %3091 = vst.msk [vmem:[%s332_s17 + $0x10] sm:$0xff] %vm369_vm0, %v3067_v41  ;;  %v3059_v62 = vadd.f32 %v3335_v33, %v3058_v58 }
 0x9d8   : > { %v3803_v38 = vpop.f32.mrf.mxu0 }
 0x9d9   : > { %3089 = vst.msk [vmem:[%s332_s17] sm:$0xff] %vm369_vm0, %v3059_v62  ;;  %v3070_v55 = vadd.f32 %v3803_v38, %v3335_v33 }
 0x9da   : > { %v3061_v14 = vpop.f32.mrf.mxu0 }
 0x9db   : > { %3092 = vst.msk [vmem:[%s332_s17 + $0x18] sm:$0xff] %vm369_vm0, %v3070_v55  ;;  %v3062_v47 = vadd.f32 %v3335_v33, %v3061_v14 }
 0x9dd   : > { %3090 = vst.msk [vmem:[%s332_s17 + $0x8] sm:$0xff] %vm369_vm0, %v3062_v47 }
 0x9df   : > { %v3806_v24 = vpop.f32.mrf.mxu0 }
 0x9e0   : > { %v3083_v27 = vadd.f32 %v3806_v24, %v3335_v33 }
 0x9e1   : > { %v3074_v16 = vpop.f32.mrf.mxu0 }
 0x9e2   : > { %3095 = vst.msk [vmem:[%s332_s17 + $0x30] sm:$0xff] %vm369_vm0, %v3083_v27  ;;  %v3075_v30 = vadd.f32 %v3335_v33, %v3074_v16 }
 0x9e3   : > { %v3807_v54 = vpop.f32.mrf.mxu0 }
 0x9e4   : > { %3093 = vst.msk [vmem:[%s332_s17 + $0x20] sm:$0xff] %vm369_vm0, %v3075_v30  ;;  %v3086_v50 = vadd.f32 %v3807_v54, %v3335_v33 }
 0x9e5   : > { %v3077_v19 = vpop.f32.mrf.mxu0 }
 0x9e6   : > { %3096 = vst.msk [vmem:[%s332_s17 + $0x38] sm:$0xff] %vm369_vm0, %v3086_v50  ;;  %v3078_v2 = vadd.f32 %v3335_v33, %v3077_v19 }
 0x9e8   : > { %3094 = vst.msk [vmem:[%s332_s17 + $0x28] sm:$0xff] %vm369_vm0, %v3078_v2 }
 0x9e9 PF: > { %s19_s30 = sadd.s32 1, %s4041_s30  }
 0x9ea   : > { %p16_p4 = scmp.ge.s32.totalorder %s19_s30, 4  }
 0x9ec   :  { %18 = sbr.rel (!%p16_p4) target bundleno = 1 (0x1), region = 86 }

</bundles_post_ra>
